<compile_context>
chip_gen: v7x
topology: tpu7x:2x2x1
jax: 0.10.0
libtpu: 0.0.40
codegen_flags: <defaults>
</compile_context>

<pallas_src>
import functools

import jax
import jax.numpy as jnp
from jax import lax
from jax.experimental import pallas as pl
from jax.experimental.pallas import tpu as pltpu

HIDDEN = 60      # logical hidden width of the PyTorch module
HP = 64          # padded hidden width used inside the kernel


def pinn_mlp_kernel(x_ref, w1_ref, wh_ref, w5c_ref, b_ref, o_ref, *, act_dtype):
    """Fused 5-layer MLP; activations are (features, batch) = (sublanes, lanes).

    x_ref  : (block_n, d_in)  natural-layout input tile (f32)
    w1_ref : (HP, d_in)       layer-1 weight, PyTorch (out,in) layout, 60->64 pad
    wh_ref : (3, HP, HP)      stacked hidden weights (layers 2..4), padded
    w5c_ref: (HP, 1)          layer-5 weight as an f32 column (VPU path), padded
    b_ref  : (HP, 5)          column k = bias of layer k+1 (zero padded);
                              b_ref[0, 4] is the scalar bias of layer 5
    o_ref  : (1, block_n)     lane-dense output tile
    """
    cdt = w1_ref.dtype  # MXU operand dtype (bf16 by default, f32 optional)

    # Layer 1: contract d_in of w1 (HP, d_in) with d_in of x (block_n, d_in)
    # -> (HP, block_n).  trans_b form lets the MXU absorb the transpose; the
    # wrapper never materializes a transposed / feature-padded copy of x.
    h = lax.dot_general(
        w1_ref[...], x_ref[...].astype(cdt),
        dimension_numbers=(((1,), (1,)), ((), ())),
        preferred_element_type=jnp.float32)
    h = jnp.tanh((h + b_ref[:, 0:1]).astype(act_dtype))

    # Layers 2..4: (HP, HP) @ (HP, block_n) -> (HP, block_n), f32 accumulate.
    for k in range(3):
        h = jnp.dot(wh_ref[k], h.astype(cdt),
                    preferred_element_type=jnp.float32)
        h = jnp.tanh((h + b_ref[:, k + 1:k + 2]).astype(act_dtype))

    # Layer 5: a 1-output-row MXU matmul pays a full weight load/drain for one
    # row, so use the VPU (+ XLU sublane reduce) instead:
    # (HP, block_n) * (HP, 1) summed over sublanes -> (1, block_n), lane dense.
    y = jnp.sum(h.astype(jnp.float32) * w5c_ref[...], axis=0, keepdims=True)
    y = jax.nn.sigmoid(y + b_ref[0:1, 4:5])          # sigmoid stays f32

    o_ref[...] = y.astype(o_ref.dtype)


def pack_params(params, *, mxu_dtype=jnp.bfloat16):
    """Pack / zero-pad the five PyTorch (W, b) pairs ONCE (hoisted out of the
    forward path -- call per parameter update, not per forward).

    params: list of 5 (W, b) pairs, W in PyTorch (out_features, in_features)
            layout, b (out_features,).
    Returns (w1p, whp, w5c, b_all) kernel operands.
    """
    f32 = jnp.float32
    (w1, b1), (w2, b2), (w3, b3), (w4, b4), (w5, b5) = params
    d_in = w1.shape[1]

    w1p = jnp.zeros((HP, d_in), f32).at[:HIDDEN, :].set(w1).astype(mxu_dtype)
    whp = jnp.zeros((3, HP, HP), f32).at[:, :HIDDEN, :HIDDEN].set(
        jnp.stack([w2, w3, w4])).astype(mxu_dtype)
    w5c = jnp.zeros((HP, 1), f32).at[:HIDDEN, 0].set(w5[0])   # f32: VPU path
    b_all = (jnp.zeros((HP, 5), f32)
             .at[:HIDDEN, 0].set(b1)
             .at[:HIDDEN, 1].set(b2)
             .at[:HIDDEN, 2].set(b3)
             .at[:HIDDEN, 3].set(b4)
             .at[0, 4].set(b5[0]))
    return (w1p, whp, w5c, b_all)


def _default_act_dtype():
    """bf16 tanh only where the VPU/EUP have a native bf16 path (v6e / v7x)."""
    try:
        kind = jax.devices()[0].device_kind.lower()
    except Exception:
        return jnp.float32
    if ("v6" in kind) or ("v7" in kind) or ("7x" in kind):
        return jnp.bfloat16
    return jnp.float32


def base_pinn_forward(x, packed_params, *, block_n=None, act_dtype=None):
    """Forward pass of BasePINN.

    x:             (N, input_dim) float32 collocation points.
    packed_params: output of pack_params().
    block_n:       batch tile (multiple of 128).  Default: auto (<=1024, and
                   keeps >=2 grid blocks so v7x's two TensorCores both work).
    act_dtype:     dtype of the tanh activations (bf16 on v6e/v7x, f32 on v5e
                   by default; accumulation / bias add / sigmoid always f32).
    Returns (N, 1) float32.
    """
    N, d_in = x.shape
    w1p, whp, w5c, b_all = packed_params
    assert w1p.shape == (HP, d_in), "packed params don't match input_dim"

    if act_dtype is None:
        act_dtype = _default_act_dtype()
    if block_n is None:
        block_n = min(1024, 128 * max(1, pl.cdiv(N, 2 * 128)))
    assert block_n % 128 == 0, "block_n must be a multiple of 128 (lane-dense)"

    # Explicit, deterministic batch padding (zeros) up to a block_n multiple.
    n_blocks = pl.cdiv(N, block_n)
    n_pad = n_blocks * block_n
    x_p = jnp.pad(x, ((0, n_pad - N), (0, 0))) if n_pad != N else x

    # Advisory cost estimate so XLA can schedule around the kernel.
    flops = 2 * N * (d_in * HIDDEN + 3 * HIDDEN * HIDDEN + HIDDEN)
    transcendentals = N * (4 * HIDDEN + 1)
    param_bytes = 4 * (HIDDEN * d_in + 3 * HIDDEN * HIDDEN + HIDDEN
                       + 4 * HIDDEN + 1)
    bytes_accessed = 4 * N * (d_in + 1) + param_bytes

    kernel = functools.partial(pinn_mlp_kernel, act_dtype=act_dtype)

    out = pl.pallas_call(
        kernel,
        out_shape=jax.ShapeDtypeStruct((1, n_pad), jnp.float32),
        grid=(n_blocks,),
        in_specs=[
            pl.BlockSpec((block_n, d_in), lambda i: (i, 0)),    # x, natural layout
            pl.BlockSpec((HP, d_in),      lambda i: (0, 0)),    # W1 (resident)
            pl.BlockSpec((3, HP, HP),     lambda i: (0, 0, 0)), # W2..W4 (resident)
            pl.BlockSpec((HP, 1),         lambda i: (0, 0)),    # W5 column (resident)
            pl.BlockSpec((HP, 5),         lambda i: (0, 0)),    # biases (resident)
        ],
        out_specs=pl.BlockSpec((1, block_n), lambda i: (0, i)),
        compiler_params=pltpu.CompilerParams(
            dimension_semantics=("parallel",)),
        cost_estimate=pl.CostEstimate(
            flops=flops,
            transcendentals=transcendentals,
            bytes_accessed=bytes_accessed),
    )(x_p, w1p, whp, w5c, b_all)

    return out[0, :N].reshape(N, 1)


def init_params(key, input_dim):
    """PyTorch-style uniform(-1/sqrt(fan_in), 1/sqrt(fan_in)) init.

    Weights in PyTorch (out_features, in_features) layout, biases (out_features,).
    """
    dims = [(HIDDEN, input_dim), (HIDDEN, HIDDEN), (HIDDEN, HIDDEN),
            (HIDDEN, HIDDEN), (1, HIDDEN)]
    params = []
    for (fan_out, fan_in) in dims:
        key, kw, kb = jax.random.split(key, 3)
        bound = 1.0 / (fan_in ** 0.5)
        w = jax.random.uniform(kw, (fan_out, fan_in), jnp.float32, -bound, bound)
        b = jax.random.uniform(kb, (fan_out,), jnp.float32, -bound, bound)
        params.append((w, b))
    return params


def reference_forward(x, params):
    h = x
    for i, (w, b) in enumerate(params):
        h = h @ w.T + b
        h = jax.nn.sigmoid(h) if i == len(params) - 1 else jnp.tanh(h)
    return h


if __name__ == "__main__":
    key = jax.random.PRNGKey(0)
    input_dim = 2          # typical PINN input: (x, t)
    N = 1000               # non-multiple of block_n -> exercises padded tail

    key, kx = jax.random.split(key)
    x = jax.random.uniform(kx, (N, input_dim), jnp.float32, -1.0, 1.0)
    params = init_params(key, input_dim)

    ref = reference_forward(x, params)

    # float32-operand path, f32 activations (tightest comparison; tolerance
    # still allows the TPU MXU's default matmul precision and the different
    # accumulation order of the fused kernel).
    packed_f32 = pack_params(params, mxu_dtype=jnp.float32)
    out_f32 = jax.block_until_ready(
        base_pinn_forward(x, packed_f32, act_dtype=jnp.float32))
    assert out_f32.shape == (N, 1)
    assert jnp.allclose(out_f32, ref, atol=1e-2, rtol=1e-2), \
        float(jnp.max(jnp.abs(out_f32 - ref)))

    # Default path: bf16 MXU operands everywhere; bf16 tanh only on v6e/v7x
    # (auto-detected), f32 accumulation / bias / sigmoid always.
    packed = pack_params(params)                     # bf16 operands (default)
    out = jax.block_until_ready(base_pinn_forward(x, packed))
    assert out.shape == (N, 1)
    assert jnp.allclose(out, ref, atol=5e-2, rtol=5e-2), \
        float(jnp.max(jnp.abs(out - ref)))

    # TODO(synk): l_b / u_b from the PyTorch __init__ are unused in forward()
    # and therefore intentionally omitted.

    print("KERNEL_OK")
</pallas_src>

<mosaic_0001>
module attributes {stable_mosaic.version = 11 : i64} {
  func.func @pinn_mlp_kernel(%arg0: i32, %arg1: memref<512x2xf32, #tpu.memory_space<vmem>>, %arg2: memref<64x2xf32, #tpu.memory_space<vmem>>, %arg3: memref<3x64x64xf32, #tpu.memory_space<vmem>>, %arg4: memref<64x1xf32, #tpu.memory_space<vmem>>, %arg5: memref<64x5xf32, #tpu.memory_space<vmem>>, %arg6: memref<1x512xf32, #tpu.memory_space<vmem>>) attributes {dimension_semantics = [#tpu.dimension_semantics<parallel>], iteration_bounds = array<i64: 2>, scalar_prefetch = 0 : i64, scratch_operands = 0 : i64, tpu.core_type = #tpu.core_type<tc>, window_params = [{transform_indices = @transform_0, window_bounds = array<i64: 512, 2>}, {pipeline_mode = #tpu.pipeline_mode<synchronous>, transform_indices = @transform_1, window_bounds = array<i64: 64, 2>}, {pipeline_mode = #tpu.pipeline_mode<synchronous>, transform_indices = @transform_2, window_bounds = array<i64: 3, 64, 64>}, {pipeline_mode = #tpu.pipeline_mode<synchronous>, transform_indices = @transform_3, window_bounds = array<i64: 64, 1>}, {pipeline_mode = #tpu.pipeline_mode<synchronous>, transform_indices = @transform_4, window_bounds = array<i64: 64, 5>}, {transform_indices = @transform_5, window_bounds = array<i64: 1, 512>}]} {
    %c0 = arith.constant 0 : index
    %c0_0 = arith.constant 0 : index
    %0 = vector.load %arg2[%c0, %c0_0] : memref<64x2xf32, #tpu.memory_space<vmem>>, vector<64x2xf32>
    %c0_1 = arith.constant 0 : index
    %c0_2 = arith.constant 0 : index
    %1 = vector.load %arg1[%c0_1, %c0_2] : memref<512x2xf32, #tpu.memory_space<vmem>>, vector<512x2xf32>
    %cst = arith.constant dense<0.000000e+00> : vector<64x512xf32>
    %2 = tpu.matmul %0, %1, %cst {dimension_numbers = #tpu.dot_dimension_numbers<[1], [1], [0], [0], [0, 0, 1, 0], [], []>} : vector<64x2xf32>, vector<512x2xf32>, vector<64x512xf32> -> vector<64x512xf32>
    %c0_3 = arith.constant 0 : index
    %c0_4 = arith.constant 0 : index
    %3 = vector.load %arg5[%c0_3, %c0_4] : memref<64x5xf32, #tpu.memory_space<vmem>>, vector<64x1xf32>
    %4 = vector.broadcast %3 : vector<64x1xf32> to vector<64x512xf32>
    %5 = arith.addf %2, %4 : vector<64x512xf32>
    %6 = math.tanh %5 : vector<64x512xf32>
    %c0_5 = arith.constant 0 : index
    %c0_6 = arith.constant 0 : index
    %c0_7 = arith.constant 0 : index
    %7 = vector.load %arg3[%c0_5, %c0_6, %c0_7] : memref<3x64x64xf32, #tpu.memory_space<vmem>>, vector<1x64x64xf32>
    %8 = vector.shape_cast %7 : vector<1x64x64xf32> to vector<64x64xf32>
    %cst_8 = arith.constant dense<0.000000e+00> : vector<64x512xf32>
    %9 = tpu.matmul %8, %6, %cst_8 {dimension_numbers = #tpu.dot_dimension_numbers<[1], [0], [0], [1], [0, 0, 1, 1], [], []>} : vector<64x64xf32>, vector<64x512xf32>, vector<64x512xf32> -> vector<64x512xf32>
    %c0_9 = arith.constant 0 : index
    %c1 = arith.constant 1 : index
    %10 = vector.load %arg5[%c0_9, %c1] : memref<64x5xf32, #tpu.memory_space<vmem>>, vector<64x1xf32>
    %11 = vector.broadcast %10 : vector<64x1xf32> to vector<64x512xf32>
    %12 = arith.addf %9, %11 : vector<64x512xf32>
    %13 = math.tanh %12 : vector<64x512xf32>
    %c1_10 = arith.constant 1 : index
    %c0_11 = arith.constant 0 : index
    %c0_12 = arith.constant 0 : index
    %14 = vector.load %arg3[%c1_10, %c0_11, %c0_12] : memref<3x64x64xf32, #tpu.memory_space<vmem>>, vector<1x64x64xf32>
    %15 = vector.shape_cast %14 : vector<1x64x64xf32> to vector<64x64xf32>
    %cst_13 = arith.constant dense<0.000000e+00> : vector<64x512xf32>
    %16 = tpu.matmul %15, %13, %cst_13 {dimension_numbers = #tpu.dot_dimension_numbers<[1], [0], [0], [1], [0, 0, 1, 1], [], []>} : vector<64x64xf32>, vector<64x512xf32>, vector<64x512xf32> -> vector<64x512xf32>
    %c0_14 = arith.constant 0 : index
    %c2 = arith.constant 2 : index
    %17 = vector.load %arg5[%c0_14, %c2] : memref<64x5xf32, #tpu.memory_space<vmem>>, vector<64x1xf32>
    %18 = vector.broadcast %17 : vector<64x1xf32> to vector<64x512xf32>
    %19 = arith.addf %16, %18 : vector<64x512xf32>
    %20 = math.tanh %19 : vector<64x512xf32>
    %c2_15 = arith.constant 2 : index
    %c0_16 = arith.constant 0 : index
    %c0_17 = arith.constant 0 : index
    %21 = vector.load %arg3[%c2_15, %c0_16, %c0_17] : memref<3x64x64xf32, #tpu.memory_space<vmem>>, vector<1x64x64xf32>
    %22 = vector.shape_cast %21 : vector<1x64x64xf32> to vector<64x64xf32>
    %cst_18 = arith.constant dense<0.000000e+00> : vector<64x512xf32>
    %23 = tpu.matmul %22, %20, %cst_18 {dimension_numbers = #tpu.dot_dimension_numbers<[1], [0], [0], [1], [0, 0, 1, 1], [], []>} : vector<64x64xf32>, vector<64x512xf32>, vector<64x512xf32> -> vector<64x512xf32>
    %c0_19 = arith.constant 0 : index
    %c3 = arith.constant 3 : index
    %24 = vector.load %arg5[%c0_19, %c3] : memref<64x5xf32, #tpu.memory_space<vmem>>, vector<64x1xf32>
    %25 = vector.broadcast %24 : vector<64x1xf32> to vector<64x512xf32>
    %26 = arith.addf %23, %25 : vector<64x512xf32>
    %27 = math.tanh %26 : vector<64x512xf32>
    %c0_20 = arith.constant 0 : index
    %c0_21 = arith.constant 0 : index
    %28 = vector.load %arg4[%c0_20, %c0_21] : memref<64x1xf32, #tpu.memory_space<vmem>>, vector<64x1xf32>
    %29 = vector.broadcast %28 : vector<64x1xf32> to vector<64x512xf32>
    %30 = arith.mulf %27, %29 : vector<64x512xf32>
    %cst_22 = arith.constant dense<0.000000e+00> : vector<512xf32>
    %31 = vector.multi_reduction <add>, %30, %cst_22 [0] : vector<64x512xf32> to vector<512xf32>
    %32 = vector.shape_cast %31 : vector<512xf32> to vector<1x512xf32>
    %c0_23 = arith.constant 0 : index
    %c4 = arith.constant 4 : index
    %33 = vector.load %arg5[%c0_23, %c4] : memref<64x5xf32, #tpu.memory_space<vmem>>, vector<1x1xf32>
    %34 = vector.broadcast %33 : vector<1x1xf32> to vector<1x512xf32>
    %35 = arith.addf %32, %34 : vector<1x512xf32>
    %36 = arith.negf %35 : vector<1x512xf32>
    %37 = math.exp %36 : vector<1x512xf32>
    %cst_24 = arith.constant 1.000000e+00 : f32
    %38 = vector.broadcast %cst_24 : f32 to vector<1x512xf32>
    %39 = arith.addf %38, %37 : vector<1x512xf32>
    %40 = arith.divf %38, %39 : vector<1x512xf32>
    %c0_25 = arith.constant 0 : index
    %c0_26 = arith.constant 0 : index
    %41 = vector.load %arg6[%c0_25, %c0_26] : memref<1x512xf32, #tpu.memory_space<vmem>>, vector<1x512xf32>
    tpu.vector_store %arg6[%c0_25, %c0_26], %40 {strides = array<i32>} : memref<1x512xf32, #tpu.memory_space<vmem>>, vector<1x512xf32>,
    return
  }
  func.func @transform_0(%arg0: i32) -> (i32, i32) {
    %c0_i32 = arith.constant 0 : i32
    %c0_i32_0 = arith.constant 0 : i32
    return %arg0, %c0_i32 : i32, i32
  }
  func.func @transform_1(%arg0: i32) -> (i32, i32) {
    %c0_i32 = arith.constant 0 : i32
    %c0_i32_0 = arith.constant 0 : i32
    %c0_i32_1 = arith.constant 0 : i32
    return %c0_i32, %c0_i32_0 : i32, i32
  }
  func.func @transform_2(%arg0: i32) -> (i32, i32, i32) {
    %c0_i32 = arith.constant 0 : i32
    %c0_i32_0 = arith.constant 0 : i32
    %c0_i32_1 = arith.constant 0 : i32
    %c0_i32_2 = arith.constant 0 : i32
    return %c0_i32, %c0_i32_0, %c0_i32_1 : i32, i32, i32
  }
  func.func @transform_3(%arg0: i32) -> (i32, i32) {
    %c0_i32 = arith.constant 0 : i32
    %c0_i32_0 = arith.constant 0 : i32
    %c0_i32_1 = arith.constant 0 : i32
    return %c0_i32, %c0_i32_0 : i32, i32
  }
  func.func @transform_4(%arg0: i32) -> (i32, i32) {
    %c0_i32 = arith.constant 0 : i32
    %c0_i32_0 = arith.constant 0 : i32
    %c0_i32_1 = arith.constant 0 : i32
    return %c0_i32, %c0_i32_0 : i32, i32
  }
  func.func @transform_5(%arg0: i32) -> (i32, i32) {
    %c0_i32 = arith.constant 0 : i32
    %c0_i32_0 = arith.constant 0 : i32
    return %c0_i32, %arg0 : i32, i32
  }
}

</mosaic_0001>

<bundles_post_ra>
// kernel: tpu_custom_call.1
= control target key start
LH: loop header
LB: loop body
LE: loop exit
PB: predicated region body
PF: predicated region fallthrough
CT: control target
= control target key end

     0   :  { %10 = vsyncpa [#allocation3], 0  ;;  %s3560_s0 = inlined_call_operand.vmem [shape: f32[1024,2], index: 0, kind: input, shape index: {}]   ;;  %s3561_s1 = inlined_call_operand.vmem [shape: f32[64,2], index: 1, kind: input, shape index: {}]   ;;  %s3562_s2 = inlined_call_operand.vmem [shape: f32[3,64,64], index: 2, kind: input, shape index: {}]   ;;  %s3563_s3 = inlined_call_operand.vmem [shape: f32[64,1], index: 3, kind: input, shape index: {}]   ;;  %s3564_s4 = inlined_call_operand.vmem [shape: f32[64,5], index: 4, kind: input, shape index: {}]   ;;  %s3565_s5 = inlined_call_operand.hbm [shape: f32[1,1024], index: 5, kind: output, shape index: {}]  }
   0x1   :  { %12 = vsyncpa [#allocation3 + $0x1], 0  ;;  %s2952_s18 = smov 0   ;;  %s2954_s19 = smov 0  }
   0x2   :  { %s2956_s20 = smov 0   ;;  %s2958_s21 = smov 0  }
   0x3 LB: > { %s2063_s22 = sadd.s32 4294967295, %s2912_s21   ;;  %s2064_s23 = sadd.s32 4294967294, %s2912_s21   ;;  %s2912_s21 = sphi %s2958_s21, %s3573_s21   ;;  %s2908_s20 = sphi %s2956_s20, %s3572_s20   ;;  %s2904_s19 = sphi %s2954_s19, %s3571_s19   ;;  %s2900_s18 = sphi %s2952_s18, %s3570_s18  }
   0x4   : > { %s2975_s24 = sadd.s32 1, %s2912_s21   ;;  %s135_s25 = sadd.s32 1, %s2908_s20 }
   0x5   : > { %s132_s26 = ssub.s32 %s2912_s21, %s2975_s24  ;;  %p145_p0 = scmp.ne.s32.totalorder %s2908_s20, %s2904_s19 }
   0x6   : > { %p133_p1 = scmp.eq.s32.totalorder %s132_s26, 0  ;;  %p146_p2 = scmp.eq.s32.totalorder %s2063_s22, 1 }
   0x7   : > { %p151_p3 = scmp.ne.s32.totalorder %s2904_s19, %s2900_s18  ;;  %p152_p4 = scmp.eq.s32.totalorder %s2064_s23, 1 }
   0x8   : > { %s2985_s27 = scalar_select %p133_p1, %s2908_s20, %s135_s25  }
   0x9   : > { %p2987_p5 = por %p146_p2, %p145_p0  ;;  %p2991_p6 = por %p152_p4, %p151_p3 }
   0xa   : > { %p2067_p7 = scmp.ge.s32.totalorder %s2912_s21, 1  ;;  %p191_p8 = scmp.lt.s32.totalorder %s2912_s21, 3 }
   0xc   : > { %p192_p9 = pnand %p2067_p7, %p191_p8 }
   0xd   : > { %s2997_s30 = sshll.u32 (!%p192_p9), %s2063_s22, 6  ;;  %vm346_vm0 = vcmask (!%p192_p9), 15360   ;;  %v3002_v0 = vld [vmem:[%s3561_s1] sm:$0xff] (!%p192_p9)  ;;  %v2914_v1 = vmov (!%p192_p9), 0   ;;  %v3020_v3 = vld [vmem:[%s3564_s4 + $0x10] sm:$0xff] (!%p192_p9)  ;;  %v3027_v4 = vld [vmem:[%s3564_s4 + $0x8] sm:$0xff] (!%p192_p9) }
   0xe   : > { %195 = sbr.rel (%p192_p9) target bundleno = 1200 (0x4b0), region = 40  ;;  %p220_p10 = scmp.lt.s32.totalorder (!%p192_p9), %s2997_s30, 127  ;;  %2257 = vmatprep.mubr.msk.f32.mxu0 (!%p192_p9), %vm346_vm0, %v3002_v0  ;;  %2305 = vmatprep.mubr.msk.f32.mxu1 (!%p192_p9), %vm346_vm0, %v3002_v0  ;;  %v3015_v2 = vld [vmem:[%s3564_s4] sm:$0xff] (!%p192_p9)  ;;  %v3032_v5 = vld [vmem:[%s3564_s4 + $0x18] sm:$0xff] (!%p192_p9)  ;;  %vm3041_vm1 = vmpackc.low (!%p192_p9), %vm346_vm0, %vm346_vm0  ;;  %vm861_vm2 = vcmask (!%p192_p9), 523264  }
   0xf   : > { %2559 = vset.pattern.permute.xlu0 (!%p192_p9), %v2914_v1  ;;  %2560 = vset.pattern.permute.xlu1 (!%p192_p9), %v2914_v1  ;;  %v3051_v10 = vld [vmem:[%s3564_s4 + $0x20] sm:$0xff] (!%p192_p9)  ;;  %v3073_v26 = vld [vmem:[%s3564_s4 + $0x30] sm:$0xff] (!%p192_p9)  ;;  %v3078_v27 = vld [vmem:[%s3564_s4 + $0x28] sm:$0xff] (!%p192_p9)  ;;  %s3518_s23 = scalar_lea.hbm (!%p192_p9), %s3565_s5, %s2997_s30  ;;  %s2921_s6 = smov (!%p192_p9), [#allocation2]  }
  0x10   : > { %308 = vperm.xlu0 (!%p192_p9), %2559, %v3015_v2   ;;  %318 = vperm.xlu1 (!%p192_p9), %2560, %v3020_v3   ;;  %v3099_v37 = vld [vmem:[%s3564_s4 + $0x38] sm:$0xff] (!%p192_p9)  ;;  %v230_v6 = vld [vmem:[%s3561_s1 + $0x20] sm:$0xff] (!%p192_p9)  ;;  %s2854_s7 = sshll.u32 (!%p192_p9), %s2921_s6, 4  ;;  %s2855_s7 = int_to_ptr.vmem [resolvable:$false] %s2854_s7 }
  0x14   : > { %313 = vperm.xlu0 (!%p192_p9), %2559, %v3027_v4   ;;  %323 = vperm.xlu1 (!%p192_p9), %2560, %v3032_v5  }
  0x15   : > { %s221_s8 = scalar_select %p220_p10, %s2997_s30, 127 }
  0x17   : > { %s2070_s13 = sshll.u32 %s221_s8, 3  ;;  %s2856_s8 = scalar_lea.vmem %s2855_s7, 128 }
  0x18   : > { %s3037_s25 = scalar_lea.vmem %s3560_s0, %s2070_s13  ;;  %328 = vperm.xlu0 %2559, %v3051_v10   ;;  %333 = vperm.xlu1 %2560, %v3078_v27   ;;  %s216_s13 = sand.u32 1, %s2904_s19  }
  0x19   : > { %v250_v7 = vld [vmem:[%s3037_s25 + $0x80] sm:$0xff]  ;;  %v251_v8 = vld [vmem:[%s3037_s25 + $0x88] sm:$0xff]  ;;  %v252_v19 = vld [vmem:[%s3037_s25 + $0x90] sm:$0xff]  ;;  %s2068_s14 = sshll.u32 %s216_s13, 2 }
  0x1a   : > { %v282_v9 = vld [vmem:[%s3037_s25 + $0x180] sm:$0xff]  ;;  %v2321_v11 = vpack.c.bf16 %v251_v8, %v250_v7  ;;  %v283_v12 = vld [vmem:[%s3037_s25 + $0x188] sm:$0xff]  ;;  %v253_v21 = vld [vmem:[%s3037_s25 + $0x98] sm:$0xff]  ;;  %s218_s15 = scalar_lea.vmem [#allocation2], %s2068_s14 }
  0x1b   : > { %v234_v13 = vld [vmem:[%s3037_s25] sm:$0xff]  ;;  %v235_v14 = vld [vmem:[%s3037_s25 + $0x8] sm:$0xff]  ;;  %v2369_v15 = vpack.c.bf16 %v283_v12, %v282_v9  ;;  %v284_v22 = vld [vmem:[%s3037_s25 + $0x190] sm:$0xff]  ;;  %v2327_v24 = vpack.c.bf16 %v253_v21, %v252_v19  ;;  %s2005_s16 = sshll.u32 %s218_s15, 4  ;;  %s3520_s16 = int_to_ptr.vmem [resolvable:$true] %s2005_s16 }
  0x1c   : > { %v2324_v16 = vpack.c.bf16 %v235_v14, %v234_v13  ;;  %v266_v17 = vld [vmem:[%s3037_s25 + $0x100] sm:$0xff]  ;;  %v267_v18 = vld [vmem:[%s3037_s25 + $0x108] sm:$0xff]  ;;  %2323 = vmatprep.subr.msk.bf16.mxu0 %vm3041_vm1, %v2321_v11  ;;  %v285_v23 = vld [vmem:[%s3037_s25 + $0x198] sm:$0xff]  ;;  %338 = vperm.xlu0 %2559, %v3073_v26   ;;  %s2850_s26 = scalar_lea.vmem %s3520_s16, 64  ;;  %p2857_p0 = scmp.lt.s32.totalorder %s3520_s16, %s2855_s7 }
  0x1d   : > { %v2372_v20 = vpack.c.bf16 %v267_v18, %v266_v17  ;;  %2371 = vmatprep.subr.msk.bf16.mxu1 %vm3041_vm1, %v2369_v15  ;;  %v2375_v25 = vpack.c.bf16 %v285_v23, %v284_v22  ;;  %v236_v28 = vld [vmem:[%s3037_s25 + $0x10] sm:$0xff]  ;;  %v237_v29 = vld [vmem:[%s3037_s25 + $0x18] sm:$0xff]  ;;  %v254_v32 = vld [vmem:[%s3037_s25 + $0xa0] sm:$0xff]  ;;  %343 = vperm.xlu1 %2560, %v3099_v37   ;;  %p2851_p11 = scmp.ne.s32.totalorder %s3520_s16, %s2850_s26  ;;  %p2858_p1 = scmp.lt.s32.totalorder %s2856_s8, %s2850_s26 }
  0x1e   : > { %2326 = vmatpush3.bf16.xpose.msk.msra.mxu0 %vm3041_vm1, %v2324_v16  ;;  %v268_v30 = vld [vmem:[%s3037_s25 + $0x110] sm:$0xff]  ;;  %v269_v31 = vld [vmem:[%s3037_s25 + $0x118] sm:$0xff]  ;;  %v255_v33 = vld [vmem:[%s3037_s25 + $0xa8] sm:$0xff]  ;;  %v2330_v36 = vpack.c.bf16 %v237_v29, %v236_v28 }
  0x1f   : > { %2374 = vmatpush3.bf16.xpose.msk.msra.mxu1 %vm3041_vm1, %v2372_v20  ;;  %2329 = vmatprep.subr.msk.bf16.mxu0 %vm3041_vm1, %v2327_v24  ;;  %v286_v34 = vld [vmem:[%s3037_s25 + $0x1a0] sm:$0xff]  ;;  %v287_v35 = vld [vmem:[%s3037_s25 + $0x1a8] sm:$0xff]  ;;  %v2378_v38 = vpack.c.bf16 %v269_v31, %v268_v30  ;;  %v2333_v39 = vpack.c.bf16 %v255_v33, %v254_v32  ;;  %v256_v45 = vld [vmem:[%s3037_s25 + $0xb0] sm:$0xff]  ;;  %p2852_p12 = pnand %p2851_p11, %p2987_p5  ;;  %p2859_p2 = por %p2858_p1, %p2857_p0 }
  0x20   : > { %2377 = vmatprep.subr.msk.bf16.mxu1 %vm3041_vm1, %v2375_v25  ;;  %v2381_v40 = vpack.c.bf16 %v287_v35, %v286_v34  ;;  %v238_v41 = vld [vmem:[%s3037_s25 + $0x20] sm:$0xff]  ;;  %v239_v42 = vld [vmem:[%s3037_s25 + $0x28] sm:$0xff]  ;;  %v257_v46 = vld [vmem:[%s3037_s25 + $0xb8] sm:$0xff] }
  0x21   : > { %v270_v43 = vld [vmem:[%s3037_s25 + $0x120] sm:$0xff]  ;;  %v271_v44 = vld [vmem:[%s3037_s25 + $0x128] sm:$0xff]  ;;  %v288_v47 = vld [vmem:[%s3037_s25 + $0x1b0] sm:$0xff]  ;;  %v2336_v49 = vpack.c.bf16 %v239_v42, %v238_v41  ;;  %v2339_v51 = vpack.c.bf16 %v257_v46, %v256_v45  ;;  %p2853_p13 = pneg %p2852_p12 }
  0x22   : > { %v289_v48 = vld [vmem:[%s3037_s25 + $0x1b8] sm:$0xff]  ;;  %v2384_v50 = vpack.c.bf16 %v271_v44, %v270_v43  ;;  %v240_v53 = vld [vmem:[%s3037_s25 + $0x30] sm:$0xff]  ;;  %v258_v57 = vld [vmem:[%s3037_s25 + $0xc0] sm:$0xff] }
  0x23   : > { %v2387_v52 = vpack.c.bf16 %v289_v48, %v288_v47  ;;  %v241_v54 = vld [vmem:[%s3037_s25 + $0x38] sm:$0xff]  ;;  %v272_v55 = vld [vmem:[%s3037_s25 + $0x130] sm:$0xff]  ;;  %v259_v58 = vld [vmem:[%s3037_s25 + $0xc8] sm:$0xff]  ;;  %p2860_p3 = pnand %p2859_p2, %p2853_p13 }
  0x24   : > { %v273_v56 = vld [vmem:[%s3037_s25 + $0x138] sm:$0xff]  ;;  %v290_v59 = vld [vmem:[%s3037_s25 + $0x1c0] sm:$0xff]  ;;  %v291_v60 = vld [vmem:[%s3037_s25 + $0x1c8] sm:$0xff]  ;;  %v2342_v61 = vpack.c.bf16 %v241_v54, %v240_v53  ;;  %v2345_v63 = vpack.c.bf16 %v259_v58, %v258_v57 }
  0x25   : > { %v2390_v62 = vpack.c.bf16 %v273_v56, %v272_v55  ;;  %v2393_v7 = vpack.c.bf16 %v291_v60, %v290_v59  ;;  %v242_v8 = vld [vmem:[%s3037_s25 + $0x40] sm:$0xff]  ;;  %v243_v9 = vld [vmem:[%s3037_s25 + $0x48] sm:$0xff]  ;;  %v260_v13 = vld [vmem:[%s3037_s25 + $0xd0] sm:$0xff]  ;;  %v2915_v59 = vmov 0.0   ;;  %v2916_v60 = vmov 1  }
  0x26   : > { %2332 = vmatpush3.bf16.xpose.msk.msra.mxu0 %vm3041_vm1, %v2330_v36  ;;  %v274_v11 = vld [vmem:[%s3037_s25 + $0x140] sm:$0xff]  ;;  %v275_v12 = vld [vmem:[%s3037_s25 + $0x148] sm:$0xff]  ;;  %v261_v14 = vld [vmem:[%s3037_s25 + $0xd8] sm:$0xff]  ;;  %v2348_v17 = vpack.c.bf16 %v243_v9, %v242_v8  ;;  %2562 = vset.pattern.permute.xlu1 %v2916_v60 }
  0x27   : > { %2380 = vmatpush3.bf16.xpose.msk.msra.mxu1 %vm3041_vm1, %v2378_v38  ;;  %2335 = vmatprep.subr.msk.bf16.mxu0 %vm3041_vm1, %v2333_v39  ;;  %v292_v15 = vld [vmem:[%s3037_s25 + $0x1d0] sm:$0xff]  ;;  %v293_v16 = vld [vmem:[%s3037_s25 + $0x1d8] sm:$0xff]  ;;  %v2396_v18 = vpack.c.bf16 %v275_v12, %v274_v11  ;;  %v2351_v19 = vpack.c.bf16 %v261_v14, %v260_v13  ;;  %v262_v25 = vld [vmem:[%s3037_s25 + $0xe0] sm:$0xff] }
  0x28   : > { %2383 = vmatprep.subr.msk.bf16.mxu1 %vm3041_vm1, %v2381_v40  ;;  %v2399_v20 = vpack.c.bf16 %v293_v16, %v292_v15  ;;  %v244_v21 = vld [vmem:[%s3037_s25 + $0x50] sm:$0xff]  ;;  %v245_v22 = vld [vmem:[%s3037_s25 + $0x58] sm:$0xff]  ;;  %v263_v28 = vld [vmem:[%s3037_s25 + $0xe8] sm:$0xff]  ;;  %2561 = vset.pattern.permute.xlu0 %v2916_v60 }
  0x29   : > { %v276_v23 = vld [vmem:[%s3037_s25 + $0x150] sm:$0xff]  ;;  %v277_v24 = vld [vmem:[%s3037_s25 + $0x158] sm:$0xff]  ;;  %v294_v29 = vld [vmem:[%s3037_s25 + $0x1e0] sm:$0xff]  ;;  %v2354_v31 = vpack.c.bf16 %v245_v22, %v244_v21  ;;  %v2357_v33 = vpack.c.bf16 %v263_v28, %v262_v25  ;;  %834 = vperm.xlu1 %2562, %v3027_v4   ;;  %830 = vperm.xlu0 %2561, %v3015_v2  }
  0x2a   : > { %v295_v30 = vld [vmem:[%s3037_s25 + $0x1e8] sm:$0xff]  ;;  %v2402_v32 = vpack.c.bf16 %v277_v24, %v276_v23  ;;  %v246_v35 = vld [vmem:[%s3037_s25 + $0x60] sm:$0xff]  ;;  %v264_v40 = vld [vmem:[%s3037_s25 + $0xf0] sm:$0xff] }
  0x2b   : > { %v2405_v34 = vpack.c.bf16 %v295_v30, %v294_v29  ;;  %v247_v36 = vld [vmem:[%s3037_s25 + $0x68] sm:$0xff]  ;;  %v278_v38 = vld [vmem:[%s3037_s25 + $0x160] sm:$0xff]  ;;  %v265_v41 = vld [vmem:[%s3037_s25 + $0xf8] sm:$0xff] }
  0x2c   : > { %v279_v39 = vld [vmem:[%s3037_s25 + $0x168] sm:$0xff]  ;;  %v296_v42 = vld [vmem:[%s3037_s25 + $0x1f0] sm:$0xff]  ;;  %v297_v43 = vld [vmem:[%s3037_s25 + $0x1f8] sm:$0xff]  ;;  %v2360_v44 = vpack.c.bf16 %v247_v36, %v246_v35  ;;  %v2363_v46 = vpack.c.bf16 %v265_v41, %v264_v40 }
  0x2d   : > { %v2408_v45 = vpack.c.bf16 %v279_v39, %v278_v38  ;;  %v2411_v47 = vpack.c.bf16 %v297_v43, %v296_v42  ;;  %v248_v48 = vld [vmem:[%s3037_s25 + $0x70] sm:$0xff]  ;;  %v227_v54 = vld [vmem:[%s3561_s1 + $0x8] sm:$0xff]  ;;  %v233_v58 = vld [vmem:[%s3561_s1 + $0x38] sm:$0xff]  ;;  %838 = vperm.xlu1 %2562, %v3020_v3   ;;  %842 = vperm.xlu0 %2561, %v3032_v5  }
  0x2e   : > { %2338 = vmatpush3.bf16.xpose.msk.msra.mxu0 %vm3041_vm1, %v2336_v49  ;;  %v249_v49 = vld [vmem:[%s3037_s25 + $0x78] sm:$0xff]  ;;  %v228_v55 = vld [vmem:[%s3561_s1 + $0x10] sm:$0xff]  ;;  %v231_v56 = vld [vmem:[%s3561_s1 + $0x28] sm:$0xff] }
  0x2f   : > { %2386 = vmatpush3.bf16.xpose.msk.msra.mxu1 %vm3041_vm1, %v2384_v50  ;;  %2341 = vmatprep.subr.msk.bf16.mxu0 %vm3041_vm1, %v2339_v51  ;;  %v280_v50 = vld [vmem:[%s3037_s25 + $0x170] sm:$0xff]  ;;  %v281_v51 = vld [vmem:[%s3037_s25 + $0x178] sm:$0xff]  ;;  %s1991_s25 = scalar_lea.sflag [#allocation3], %s216_s13 }
  0x30   : > { %2389 = vmatprep.subr.msk.bf16.mxu1 %vm3041_vm1, %v2387_v52  ;;  %v2366_v52 = vpack.c.bf16 %v249_v49, %v248_v48  ;;  %v2414_v53 = vpack.c.bf16 %v281_v51, %v280_v50  ;;  %v232_v57 = vld [vmem:[%s3561_s1 + $0x30] sm:$0xff] }
  0x31   : > { %846 = vperm.xlu1 %2562, %v3051_v10   ;;  %850 = vperm.xlu0 %2561, %v3078_v27  }
  0x35   : > { %854 = vperm.xlu1 %2562, %v3073_v26   ;;  %858 = vperm.xlu0 %2561, %v3099_v37  }
  0x36   : > { %2344 = vmatpush3.bf16.xpose.msk.msra.mxu0 %vm3041_vm1, %v2342_v61 }
  0x37   : > { %2392 = vmatpush3.bf16.xpose.msk.msra.mxu1 %vm3041_vm1, %v2390_v62  ;;  %2347 = vmatprep.subr.msk.bf16.mxu0 %vm3041_vm1, %v2345_v63 }
  0x38   : > { %2395 = vmatprep.subr.msk.bf16.mxu1 %vm3041_vm1, %v2393_v7 }
  0x3e   : > { %2350 = vmatpush3.bf16.xpose.msk.msra.mxu0 %vm3041_vm1, %v2348_v17 }
  0x3f   : > { %2398 = vmatpush3.bf16.xpose.msk.msra.mxu1 %vm3041_vm1, %v2396_v18  ;;  %2353 = vmatprep.subr.msk.bf16.mxu0 %vm3041_vm1, %v2351_v19 }
  0x40   : > { %2401 = vmatprep.subr.msk.bf16.mxu1 %vm3041_vm1, %v2399_v20 }
  0x46   : > { %2356 = vmatpush3.bf16.xpose.msk.msra.mxu0 %vm3041_vm1, %v2354_v31 }
  0x47   : > { %2404 = vmatpush3.bf16.xpose.msk.msra.mxu1 %vm3041_vm1, %v2402_v32  ;;  %2359 = vmatprep.subr.msk.bf16.mxu0 %vm3041_vm1, %v2357_v33 }
  0x48   : > { %2407 = vmatprep.subr.msk.bf16.mxu1 %vm3041_vm1, %v2405_v34 }
  0x4e   : > { %2362 = vmatpush3.bf16.xpose.msk.msra.mxu0 %vm3041_vm1, %v2360_v44 }
  0x4f   : > { %2410 = vmatpush3.bf16.xpose.msk.msra.mxu1 %vm3041_vm1, %v2408_v45  ;;  %2365 = vmatprep.subr.msk.bf16.mxu0 %vm3041_vm1, %v2363_v46 }
  0x50   : > { %2413 = vmatprep.subr.msk.bf16.mxu1 %vm3041_vm1, %v2411_v47 }
  0x56   : > { %2368 = vmatpush3.bf16.xpose.msk.msra.mxu0 %vm3041_vm1, %v2366_v52 }
  0x57   : > { %2416 = vmatpush3.bf16.xpose.msk.msra.mxu1 %vm3041_vm1, %v2414_v53 }
  0x5d   : > { %2258 = vmatmul.mubr.msk.f32.vlgmr.msra.gmra.mrb[0].mxu0 %vm346_vm0, %v3002_v0 }
  0x5e   : > { %2306 = vmatmul.mubr.msk.f32.vlgmr.msra.gmra.mrb[0].mxu1 %vm346_vm0, %v3002_v0  ;;  %2259 = vmatprep.mubr.msk.f32.mxu0 %vm346_vm0, %v227_v54  ;;  %v229_v0 = vld [vmem:[%s3561_s1 + $0x18] sm:$0xff] }
  0x5f   : > { %2307 = vmatprep.mubr.msk.f32.mxu1 %vm346_vm0, %v227_v54 }
  0x61   : > { %2260 = vmatmul.mubr.msk.f32.gmra.mrb[2].mxu0 %vm346_vm0, %v227_v54 }
  0x62   : > { %2308 = vmatmul.mubr.msk.f32.gmra.mrb[2].mxu1 %vm346_vm0, %v227_v54  ;;  %2261 = vmatprep.mubr.msk.f32.mxu0 %vm346_vm0, %v228_v55 }
  0x63   : > { %2309 = vmatprep.mubr.msk.f32.mxu1 %vm346_vm0, %v228_v55 }
  0x65   : > { %2262 = vmatmul.mubr.msk.f32.gmra.mrb[4].mxu0 %vm346_vm0, %v228_v55 }
  0x66   : > { %2310 = vmatmul.mubr.msk.f32.gmra.mrb[4].mxu1 %vm346_vm0, %v228_v55  ;;  %2263 = vmatprep.mubr.msk.f32.mxu0 %vm346_vm0, %v229_v0 }
  0x67   : > { %2311 = vmatprep.mubr.msk.f32.mxu1 %vm346_vm0, %v229_v0 }
  0x69   : > { %2264 = vmatmul.mubr.msk.f32.gmra.mrb[6].mxu0 %vm346_vm0, %v229_v0 }
  0x6a   : > { %2312 = vmatmul.mubr.msk.f32.gmra.mrb[6].mxu1 %vm346_vm0, %v229_v0  ;;  %2265 = vmatprep.mubr.msk.f32.mxu0 %vm346_vm0, %v230_v6 }
  0x6b   : > { %2313 = vmatprep.mubr.msk.f32.mxu1 %vm346_vm0, %v230_v6 }
  0x6d   : > { %2266 = vmatmul.mubr.msk.f32.gmra.mrb[8].mxu0 %vm346_vm0, %v230_v6 }
  0x6e   : > { %2314 = vmatmul.mubr.msk.f32.gmra.mrb[8].mxu1 %vm346_vm0, %v230_v6  ;;  %2267 = vmatprep.mubr.msk.f32.mxu0 %vm346_vm0, %v231_v56 }
  0x6f   : > { %2315 = vmatprep.mubr.msk.f32.mxu1 %vm346_vm0, %v231_v56 }
  0x71   : > { %2268 = vmatmul.mubr.msk.f32.gmra.mrb[10].mxu0 %vm346_vm0, %v231_v56 }
  0x72   : > { %2316 = vmatmul.mubr.msk.f32.gmra.mrb[10].mxu1 %vm346_vm0, %v231_v56  ;;  %2269 = vmatprep.mubr.msk.f32.mxu0 %vm346_vm0, %v232_v57 }
  0x73   : > { %2317 = vmatprep.mubr.msk.f32.mxu1 %vm346_vm0, %v232_v57 }
  0x75   : > { %2270 = vmatmul.mubr.msk.f32.gmra.mrb[12].mxu0 %vm346_vm0, %v232_v57 }
  0x76   : > { %2318 = vmatmul.mubr.msk.f32.gmra.mrb[12].mxu1 %vm346_vm0, %v232_v57  ;;  %2271 = vmatprep.mubr.msk.f32.mxu0 %vm346_vm0, %v233_v58 }
  0x77   : > { %2319 = vmatprep.mubr.msk.f32.mxu1 %vm346_vm0, %v233_v58 }
  0x79   : > { %2272 = vmatmul.mubr.msk.f32.gmra.mrb[14].mxu0 %vm346_vm0, %v233_v58 }
  0x7a   : > { %2320 = vmatmul.mubr.msk.f32.gmra.mrb[14].mxu1 %vm346_vm0, %v233_v58  ;;  %950 = vmatprep.mubr.f32.mxu0 %v2915_v59 }
  0x7b   : > { %1063 = vmatprep.mubr.f32.mxu1 %v2915_v59 }
  0x8f   : > { %v309_v61 = vpop.permute.xlu0 %308  ;;  %v319_v19 = vpop.permute.xlu1 %318 }
  0x93   : > { %v314_v9 = vpop.permute.xlu0 %313  ;;  %v324_v34 = vpop.permute.xlu1 %323 }
  0x97   : > { %v329_v48 = vpop.permute.xlu0 %328 }
 0x130   : > { %v629_v62 = vpop.f32.mrb[0].mxu0 }
 0x131   : > { %v630_v63 = vadd.f32 %v629_v62, %v309_v61  ;;  %v742_v7 = vpop.f32.mrb[0].mxu1  ;;  %v631_v8 = vpop.f32.mrb[1].mxu0 }
 0x132   : > { %v743_v11 = vadd.f32 %v742_v7, %v309_v61  ;;  %v632_v12 = vadd.f32 %v631_v8, %v309_v61  ;;  %v744_v13 = vpop.f32.mrb[1].mxu1  ;;  %v334_v62 = vpop.permute.xlu1 %333 }
 0x133   : > { %2570 = vtanh.f32 %v630_v63  ;;  %v745_v14 = vadd.f32 %v744_v13, %v309_v61 }
 0x134   : > { %2572 = vtanh.f32 %v743_v11  ;;  %v635_v15 = vpop.f32.mrb[2].mxu0 }
 0x135   : > { %2574 = vtanh.f32 %v632_v12  ;;  %v636_v16 = vadd.f32 %v635_v15, %v314_v9  ;;  %v748_v17 = vpop.f32.mrb[2].mxu1  ;;  %v637_v18 = vpop.f32.mrb[3].mxu0 }
 0x136   : > { %2576 = vtanh.f32 %v745_v14  ;;  %v749_v20 = vadd.f32 %v748_v17, %v314_v9  ;;  %v638_v21 = vadd.f32 %v637_v18, %v314_v9  ;;  %v750_v22 = vpop.f32.mrb[3].mxu1 }
 0x137   : > { %2578 = vtanh.f32 %v636_v16  ;;  %v751_v23 = vadd.f32 %v750_v22, %v314_v9 }
 0x138   : > { %2580 = vtanh.f32 %v749_v20  ;;  %v641_v24 = vpop.f32.mrb[4].mxu0 }
 0x139   : > { %2582 = vtanh.f32 %v638_v21  ;;  %v642_v25 = vadd.f32 %v641_v24, %v319_v19  ;;  %v754_v28 = vpop.f32.mrb[4].mxu1  ;;  %v643_v29 = vpop.f32.mrb[5].mxu0 }
 0x13a   : > { %2584 = vtanh.f32 %v751_v23  ;;  %v755_v30 = vadd.f32 %v754_v28, %v319_v19  ;;  %v644_v31 = vadd.f32 %v643_v29, %v319_v19  ;;  %v756_v32 = vpop.f32.mrb[5].mxu1  ;;  %v339_v21 = vpop.permute.xlu0 %338 }
 0x13b   : > { %2586 = vtanh.f32 %v642_v25  ;;  %v757_v33 = vadd.f32 %v756_v32, %v319_v19 }
 0x13c   : > { %2588 = vtanh.f32 %v755_v30  ;;  %v647_v35 = vpop.f32.mrb[6].mxu0 }
 0x13d   : > { %v2571_v36 = vpop.eup %2570  ;;  %2590 = vtanh.f32 %v644_v31  ;;  %v648_v38 = vadd.f32 %v647_v35, %v324_v34  ;;  %v760_v39 = vpop.f32.mrb[6].mxu1 }
 0x13e   : > { %v649_v40 = vpop.f32.mrb[7].mxu0  ;;  %v2573_v41 = vpop.eup %2572  ;;  %2592 = vtanh.f32 %v757_v33  ;;  %v761_v42 = vadd.f32 %v760_v39, %v324_v34 }
 0x13f   : > { %v650_v43 = vadd.f32 %v649_v40, %v324_v34  ;;  %v762_v44 = vpop.f32.mrb[7].mxu1  ;;  %v2575_v45 = vpop.eup %2574  ;;  %2594 = vtanh.f32 %v648_v38 }
 0x140   : > { %v763_v46 = vadd.f32 %v762_v44, %v324_v34  ;;  %v2577_v47 = vpop.eup %2576  ;;  %2596 = vtanh.f32 %v761_v42  ;;  %v653_v49 = vpop.f32.mrb[8].mxu0 }
 0x141   : > { %v2579_v50 = vpop.eup %2578  ;;  %2598 = vtanh.f32 %v650_v43  ;;  %v654_v51 = vadd.f32 %v653_v49, %v329_v48  ;;  %v766_v52 = vpop.f32.mrb[8].mxu1 }
 0x142   : > { %v655_v53 = vpop.f32.mrb[9].mxu0  ;;  %v2581_v54 = vpop.eup %2580  ;;  %2600 = vtanh.f32 %v763_v46  ;;  %v767_v55 = vadd.f32 %v766_v52, %v329_v48  ;;  %v2419_v56 = vpack.c.bf16 %v2579_v50, %v2571_v36 }
 0x143   : > { %v656_v0 = vadd.f32 %v655_v53, %v329_v48  ;;  %v768_v6 = vpop.f32.mrb[9].mxu1  ;;  %v2583_v57 = vpop.eup %2582  ;;  %2602 = vtanh.f32 %v654_v51  ;;  %v2435_v60 = vpack.c.bf16 %v2581_v54, %v2573_v41 }
 0x144   : > { %v769_v58 = vadd.f32 %v768_v6, %v329_v48  ;;  %v2585_v61 = vpop.eup %2584  ;;  %2604 = vtanh.f32 %v767_v55  ;;  %v659_v63 = vpop.f32.mrb[10].mxu0  ;;  %v2417_v7 = vpack.c.bf16 %v2583_v57, %v2575_v45 }
 0x145   : > { %v2587_v8 = vpop.eup %2586  ;;  %2606 = vtanh.f32 %v656_v0  ;;  %v660_v9 = vadd.f32 %v659_v63, %v334_v62  ;;  %v772_v11 = vpop.f32.mrb[10].mxu1  ;;  %v2433_v13 = vpack.c.bf16 %v2585_v61, %v2577_v47 }
 0x146   : > { %v661_v12 = vpop.f32.mrb[11].mxu0  ;;  %v2589_v14 = vpop.eup %2588  ;;  %2608 = vtanh.f32 %v769_v58  ;;  %v773_v15 = vadd.f32 %v772_v11, %v334_v62  ;;  %2418 = vmatprep.subr.bf16.mxu0 %v2417_v7 }
 0x147   : > { %v662_v16 = vadd.f32 %v661_v12, %v334_v62  ;;  %v774_v17 = vpop.f32.mrb[11].mxu1  ;;  %v2591_v18 = vpop.eup %2590  ;;  %2610 = vtanh.f32 %v660_v9  ;;  %2434 = vmatprep.subr.bf16.mxu1 %v2433_v13  ;;  %2420 = vmatpush1.bf16.msra.mxu0 %v2419_v56 }
 0x148   : > { %v775_v19 = vadd.f32 %v774_v17, %v334_v62  ;;  %v2593_v20 = vpop.eup %2592  ;;  %2612 = vtanh.f32 %v773_v15  ;;  %2436 = vmatpush1.bf16.msra.mxu1 %v2435_v60  ;;  %v665_v22 = vpop.f32.mrb[12].mxu0  ;;  %v821_v17 = vld [vmem:[%s3562_s2] sm:$0xff] }
 0x149   : > { %v2595_v23 = vpop.eup %2594  ;;  %2614 = vtanh.f32 %v662_v16  ;;  %v666_v24 = vadd.f32 %v665_v22, %v339_v21  ;;  %v778_v25 = vpop.f32.mrb[12].mxu1  ;;  %v826_v22 = vld [vmem:[%s3562_s2 + $0x28] sm:$0xff] }
 0x14a   : > { %v667_v28 = vpop.f32.mrb[13].mxu0  ;;  %v2597_v29 = vpop.eup %2596  ;;  %2616 = vtanh.f32 %v775_v19  ;;  %v779_v30 = vadd.f32 %v778_v25, %v339_v21  ;;  %v2423_v33 = vpack.c.bf16 %v2595_v23, %v2587_v8  ;;  %v823_v19 = vld [vmem:[%s3562_s2 + $0x10] sm:$0xff]  ;;  %v2917_v25 = vmov 2  }
 0x14b   : > { %v668_v31 = vadd.f32 %v667_v28, %v339_v21  ;;  %v780_v32 = vpop.f32.mrb[13].mxu1  ;;  %v2599_v34 = vpop.eup %2598  ;;  %2618 = vtanh.f32 %v666_v24  ;;  %v2439_v36 = vpack.c.bf16 %v2597_v29, %v2589_v14  ;;  %v827_v23 = vld [vmem:[%s3562_s2 + $0x30] sm:$0xff]  ;;  %v828_v24 = vld [vmem:[%s3562_s2 + $0x38] sm:$0xff]  ;;  %2563 = vset.pattern.permute.xlu1 %v2917_v25  ;;  %2564 = vset.pattern.permute.xlu0 %v2917_v25 }
 0x14c   : > { %v781_v35 = vadd.f32 %v780_v32, %v339_v21  ;;  %v2601_v38 = vpop.eup %2600  ;;  %v344_v39 = vpop.permute.xlu1 %343  ;;  %2620 = vtanh.f32 %v779_v30  ;;  %v2421_v41 = vpack.c.bf16 %v2599_v34, %v2591_v18  ;;  %v822_v18 = vld [vmem:[%s3562_s2 + $0x8] sm:$0xff]  ;;  %v825_v21 = vld [vmem:[%s3562_s2 + $0x20] sm:$0xff]  ;;  %1154 = vperm.xlu1 %2563, %v3015_v2   ;;  %1158 = vperm.xlu0 %2564, %v3027_v4  }
 0x14d   : > { %v671_v40 = vpop.f32.mrb[14].mxu0  ;;  %v2603_v42 = vpop.eup %2602  ;;  %2622 = vtanh.f32 %v668_v31  ;;  %v2437_v46 = vpack.c.bf16 %v2601_v38, %v2593_v20  ;;  %v824_v20 = vld [vmem:[%s3562_s2 + $0x18] sm:$0xff] }
 0x14e   : > { %v672_v43 = vadd.f32 %v671_v40, %v344_v39  ;;  %v784_v44 = vpop.f32.mrb[14].mxu1  ;;  %v673_v45 = vpop.f32.mrb[15].mxu0  ;;  %2624 = vtanh.f32 %v781_v35  ;;  %2422 = vmatprep.subr.bf16.mxu0 %v2421_v41 }
 0x14f   : > { %v2605_v47 = vpop.eup %2604  ;;  %v785_v48 = vadd.f32 %v784_v44, %v344_v39  ;;  %v674_v49 = vadd.f32 %v673_v45, %v344_v39  ;;  %v786_v50 = vpop.f32.mrb[15].mxu1  ;;  %2438 = vmatprep.subr.bf16.mxu1 %v2437_v46  ;;  %2424 = vmatpush1.bf16.msra.mxu0 %v2423_v33 }
 0x150   : > { %v2607_v51 = vpop.eup %2606  ;;  %2626 = vtanh.f32 %v672_v43  ;;  %v787_v52 = vadd.f32 %v786_v50, %v344_v39  ;;  %2440 = vmatpush1.bf16.msra.mxu1 %v2439_v36  ;;  %1162 = vperm.xlu1 %2563, %v3020_v3   ;;  %v831_v28 = vpop.permute.xlu0 %830 }
 0x151   : > { %v2609_v53 = vpop.eup %2608  ;;  %2628 = vtanh.f32 %v785_v48  ;;  %1170 = vperm.xlu0 %2564, %v3051_v10   ;;  %v835_v29 = vpop.permute.xlu1 %834 }
 0x152   : > { %v2611_v54 = vpop.eup %2610  ;;  %2630 = vtanh.f32 %v674_v49 }
 0x153   : > { %v2613_v55 = vpop.eup %2612  ;;  %2632 = vtanh.f32 %v787_v52  ;;  %v2427_v0 = vpack.c.bf16 %v2611_v54, %v2603_v42 }
 0x154   : > { %v2615_v6 = vpop.eup %2614  ;;  %v2443_v56 = vpack.c.bf16 %v2613_v55, %v2605_v47  ;;  %1166 = vperm.xlu1 %2563, %v3032_v5   ;;  %v843_v48 = vpop.permute.xlu0 %842 }
 0x155   : > { %v2617_v57 = vpop.eup %2616  ;;  %v2425_v58 = vpack.c.bf16 %v2615_v6, %v2607_v51  ;;  %1178 = vperm.xlu0 %2564, %v3073_v26  }
 0x156   : > { %v2619_v60 = vpop.eup %2618  ;;  %v2441_v61 = vpack.c.bf16 %v2617_v57, %v2609_v53 }
 0x157   : > { %v2621_v62 = vpop.eup %2620  ;;  %2426 = vmatprep.subr.bf16.mxu0 %v2425_v58 }
 0x158   : > { %v2623_v63 = vpop.eup %2622  ;;  %2442 = vmatprep.subr.bf16.mxu1 %v2441_v61  ;;  %2428 = vmatpush1.bf16.msra.mxu0 %v2427_v0 }
 0x159   : > { %v2625_v7 = vpop.eup %2624  ;;  %2444 = vmatpush1.bf16.msra.mxu1 %v2443_v56  ;;  %1174 = vperm.xlu1 %2563, %v3078_v27   ;;  %v839_v27 = vpop.permute.xlu1 %838 }
 0x15a   : > { %v2627_v8 = vpop.eup %2626 }
 0x15b   : > { %v2629_v9 = vpop.eup %2628  ;;  %v2431_v11 = vpack.c.bf16 %v2627_v8, %v2619_v60 }
 0x15c   : > { %v2631_v12 = vpop.eup %2630  ;;  %v2447_v13 = vpack.c.bf16 %v2629_v9, %v2621_v62 }
 0x15d   : > { %v2633_v14 = vpop.eup %2632  ;;  %v2429_v15 = vpack.c.bf16 %v2631_v12, %v2623_v63  ;;  %1182 = vperm.xlu1 %2563, %v3099_v37   ;;  %v847_v60 = vpop.permute.xlu1 %846 }
 0x15e   : > { %v2445_v16 = vpack.c.bf16 %v2633_v14, %v2625_v7 }
 0x15f   : > { %2430 = vmatprep.subr.bf16.mxu0 %v2429_v15 }
 0x160   : > { %2446 = vmatprep.subr.bf16.mxu1 %v2445_v16  ;;  %2432 = vmatpush1.bf16.msra.mxu0 %v2431_v11 }
 0x161   : > { %2448 = vmatpush1.bf16.msra.mxu1 %v2447_v13 }
 0x163   : > { %2151 = vmatmul.mubr.msk.f32.vlgmr.msra.gmra.mrb[16].mxu0 %vm861_vm2, %v821_v17 }
 0x164   : > { %2159 = vmatmul.mubr.msk.f32.vlgmr.msra.gmra.mrb[16].mxu1 %vm861_vm2, %v821_v17  ;;  %956 = vmatprep.mubr.f32.mxu0 %v2915_v59 }
 0x165   : > { %1069 = vmatprep.mubr.f32.mxu1 %v2915_v59 }
 0x167   : > { %2152 = vmatmul.mubr.msk.f32.gmra.mrb[18].mxu0 %vm861_vm2, %v822_v18 }
 0x168   : > { %2160 = vmatmul.mubr.msk.f32.gmra.mrb[18].mxu1 %vm861_vm2, %v822_v18  ;;  %962 = vmatprep.mubr.f32.mxu0 %v2915_v59 }
 0x169   : > { %1075 = vmatprep.mubr.f32.mxu1 %v2915_v59 }
 0x16b   : > { %2153 = vmatmul.mubr.msk.f32.gmra.mrb[20].mxu0 %vm861_vm2, %v823_v19 }
 0x16c   : > { %2161 = vmatmul.mubr.msk.f32.gmra.mrb[20].mxu1 %vm861_vm2, %v823_v19  ;;  %968 = vmatprep.mubr.f32.mxu0 %v2915_v59  ;;  %v851_v19 = vpop.permute.xlu0 %850 }
 0x16d   : > { %1081 = vmatprep.mubr.f32.mxu1 %v2915_v59 }
 0x16f   : > { %2154 = vmatmul.mubr.msk.f32.gmra.mrb[22].mxu0 %vm861_vm2, %v824_v20 }
 0x170   : > { %2162 = vmatmul.mubr.msk.f32.gmra.mrb[22].mxu1 %vm861_vm2, %v824_v20  ;;  %974 = vmatprep.mubr.f32.mxu0 %v2915_v59 }
 0x171   : > { %1087 = vmatprep.mubr.f32.mxu1 %v2915_v59 }
 0x173   : > { %2155 = vmatmul.mubr.msk.f32.gmra.mrb[24].mxu0 %vm861_vm2, %v825_v21 }
 0x174   : > { %2163 = vmatmul.mubr.msk.f32.gmra.mrb[24].mxu1 %vm861_vm2, %v825_v21  ;;  %980 = vmatprep.mubr.f32.mxu0 %v2915_v59 }
 0x175   : > { %1093 = vmatprep.mubr.f32.mxu1 %v2915_v59 }
 0x177   : > { %2156 = vmatmul.mubr.msk.f32.gmra.mrb[26].mxu0 %vm861_vm2, %v826_v22 }
 0x178   : > { %2164 = vmatmul.mubr.msk.f32.gmra.mrb[26].mxu1 %vm861_vm2, %v826_v22  ;;  %986 = vmatprep.mubr.f32.mxu0 %v2915_v59 }
 0x179   : > { %1099 = vmatprep.mubr.f32.mxu1 %v2915_v59 }
 0x17b   : > { %2157 = vmatmul.mubr.msk.f32.gmra.mrb[28].mxu0 %vm861_vm2, %v827_v23 }
 0x17c   : > { %2165 = vmatmul.mubr.msk.f32.gmra.mrb[28].mxu1 %vm861_vm2, %v827_v23  ;;  %992 = vmatprep.mubr.f32.mxu0 %v2915_v59 }
 0x17d   : > { %1105 = vmatprep.mubr.f32.mxu1 %v2915_v59 }
 0x17f   : > { %2158 = vmatmul.mubr.msk.f32.gmra.mrb[30].mxu0 %vm861_vm2, %v828_v24 }
 0x180   : > { %2166 = vmatmul.mubr.msk.f32.gmra.mrb[30].mxu1 %vm861_vm2, %v828_v24  ;;  %1273 = vmatprep.mubr.f32.mxu0 %v2915_v59 }
 0x181   : > { %1386 = vmatprep.mubr.f32.mxu1 %v2915_v59 }
 0x236   : > { %v952_v30 = vpop.f32.mrb[16].mxu0 }
 0x237   : > { %v953_v31 = vadd.f32 %v952_v30, %v831_v28  ;;  %v1065_v32 = vpop.f32.mrb[16].mxu1  ;;  %v954_v2 = vpop.f32.mrb[17].mxu0 }
 0x238   : > { %v1066_v33 = vadd.f32 %v1065_v32, %v831_v28  ;;  %v955_v4 = vadd.f32 %v954_v2, %v831_v28  ;;  %v1067_v34 = vpop.f32.mrb[17].mxu1 }
 0x239   : > { %2634 = vtanh.f32 %v953_v31  ;;  %v1068_v3 = vadd.f32 %v1067_v34, %v831_v28  ;;  %v855_v34 = vpop.permute.xlu1 %854 }
 0x23a   : > { %2636 = vtanh.f32 %v1066_v33  ;;  %v958_v10 = vpop.f32.mrb[18].mxu0 }
 0x23b   : > { %2638 = vtanh.f32 %v955_v4  ;;  %v959_v5 = vadd.f32 %v958_v10, %v835_v29  ;;  %v1071_v26 = vpop.f32.mrb[18].mxu1  ;;  %v960_v35 = vpop.f32.mrb[19].mxu0 }
 0x23c   : > { %2640 = vtanh.f32 %v1068_v3  ;;  %v1072_v37 = vadd.f32 %v1071_v26, %v835_v29  ;;  %v961_v36 = vadd.f32 %v960_v35, %v835_v29  ;;  %v1073_v38 = vpop.f32.mrb[19].mxu1 }
 0x23d   : > { %2642 = vtanh.f32 %v959_v5  ;;  %v1074_v39 = vadd.f32 %v1073_v38, %v835_v29 }
 0x23e   : > { %2644 = vtanh.f32 %v1072_v37  ;;  %v964_v40 = vpop.f32.mrb[20].mxu0 }
 0x23f   : > { %2646 = vtanh.f32 %v961_v36  ;;  %v965_v41 = vadd.f32 %v964_v40, %v839_v27  ;;  %v1077_v42 = vpop.f32.mrb[20].mxu1  ;;  %v966_v43 = vpop.f32.mrb[21].mxu0 }
 0x240   : > { %2648 = vtanh.f32 %v1074_v39  ;;  %v1078_v44 = vadd.f32 %v1077_v42, %v839_v27  ;;  %v967_v45 = vadd.f32 %v966_v43, %v839_v27  ;;  %v1079_v46 = vpop.f32.mrb[21].mxu1 }
 0x241   : > { %2650 = vtanh.f32 %v965_v41  ;;  %v1080_v47 = vadd.f32 %v1079_v46, %v839_v27 }
 0x242   : > { %2652 = vtanh.f32 %v1078_v44  ;;  %v970_v49 = vpop.f32.mrb[22].mxu0  ;;  %v859_v44 = vpop.permute.xlu0 %858 }
 0x243   : > { %v2635_v50 = vpop.eup %2634  ;;  %2654 = vtanh.f32 %v967_v45  ;;  %v971_v51 = vadd.f32 %v970_v49, %v843_v48  ;;  %v1083_v52 = vpop.f32.mrb[22].mxu1 }
 0x244   : > { %v972_v53 = vpop.f32.mrb[23].mxu0  ;;  %v2637_v54 = vpop.eup %2636  ;;  %2656 = vtanh.f32 %v1080_v47  ;;  %v1084_v55 = vadd.f32 %v1083_v52, %v843_v48 }
 0x245   : > { %v973_v0 = vadd.f32 %v972_v53, %v843_v48  ;;  %v1085_v6 = vpop.f32.mrb[23].mxu1  ;;  %v2639_v56 = vpop.eup %2638  ;;  %2658 = vtanh.f32 %v971_v51 }
 0x246   : > { %v1086_v57 = vadd.f32 %v1085_v6, %v843_v48  ;;  %v2641_v58 = vpop.eup %2640  ;;  %2660 = vtanh.f32 %v1084_v55  ;;  %v976_v61 = vpop.f32.mrb[24].mxu0 }
 0x247   : > { %v2643_v62 = vpop.eup %2642  ;;  %2662 = vtanh.f32 %v973_v0  ;;  %v977_v63 = vadd.f32 %v976_v61, %v847_v60  ;;  %v1089_v7 = vpop.f32.mrb[24].mxu1 }
 0x248   : > { %v978_v8 = vpop.f32.mrb[25].mxu0  ;;  %v2645_v9 = vpop.eup %2644  ;;  %2664 = vtanh.f32 %v1086_v57  ;;  %v1090_v11 = vadd.f32 %v1089_v7, %v847_v60  ;;  %v2451_v14 = vpack.c.bf16 %v2643_v62, %v2635_v50 }
 0x249   : > { %v979_v12 = vadd.f32 %v978_v8, %v847_v60  ;;  %v1091_v13 = vpop.f32.mrb[25].mxu1  ;;  %v2647_v15 = vpop.eup %2646  ;;  %2666 = vtanh.f32 %v977_v63  ;;  %v2467_v17 = vpack.c.bf16 %v2645_v9, %v2637_v54 }
 0x24a   : > { %v1092_v16 = vadd.f32 %v1091_v13, %v847_v60  ;;  %v2649_v18 = vpop.eup %2648  ;;  %2668 = vtanh.f32 %v1090_v11  ;;  %v982_v20 = vpop.f32.mrb[26].mxu0  ;;  %v2449_v21 = vpack.c.bf16 %v2647_v15, %v2639_v56 }
 0x24b   : > { %v2651_v22 = vpop.eup %2650  ;;  %2670 = vtanh.f32 %v979_v12  ;;  %v983_v23 = vadd.f32 %v982_v20, %v851_v19  ;;  %v1095_v24 = vpop.f32.mrb[26].mxu1  ;;  %v2465_v28 = vpack.c.bf16 %v2649_v18, %v2641_v58 }
 0x24c   : > { %v984_v25 = vpop.f32.mrb[27].mxu0  ;;  %v2653_v29 = vpop.eup %2652  ;;  %2672 = vtanh.f32 %v1092_v16  ;;  %v1096_v30 = vadd.f32 %v1095_v24, %v851_v19  ;;  %2450 = vmatprep.subr.bf16.mxu0 %v2449_v21  ;;  %v2169_v24 = vld [vmem:[%s3562_s2 + $0x50] sm:$0xff] }
 0x24d   : > { %v985_v31 = vadd.f32 %v984_v25, %v851_v19  ;;  %v1097_v32 = vpop.f32.mrb[27].mxu1  ;;  %v2655_v2 = vpop.eup %2654  ;;  %2674 = vtanh.f32 %v983_v23  ;;  %2466 = vmatprep.subr.bf16.mxu1 %v2465_v28  ;;  %2452 = vmatpush1.bf16.msra.mxu0 %v2451_v14  ;;  %v2168_v23 = vld [vmem:[%s3562_s2 + $0x48] sm:$0xff]  ;;  %v2170_v25 = vld [vmem:[%s3562_s2 + $0x58] sm:$0xff]  ;;  %v2171_v28 = vld [vmem:[%s3562_s2 + $0x60] sm:$0xff] }
 0x24e   : > { %v1098_v33 = vadd.f32 %v1097_v32, %v851_v19  ;;  %v2657_v4 = vpop.eup %2656  ;;  %2676 = vtanh.f32 %v1096_v30  ;;  %2468 = vmatpush1.bf16.msra.mxu1 %v2467_v17  ;;  %v988_v3 = vpop.f32.mrb[28].mxu0  ;;  %v2173_v30 = vld [vmem:[%s3562_s2 + $0x70] sm:$0xff]  ;;  %v2918_v32 = vmov 3  }
 0x24f   : > { %v2659_v10 = vpop.eup %2658  ;;  %2678 = vtanh.f32 %v985_v31  ;;  %v989_v5 = vadd.f32 %v988_v3, %v855_v34  ;;  %v1101_v26 = vpop.f32.mrb[28].mxu1  ;;  %v2174_v31 = vld [vmem:[%s3562_s2 + $0x78] sm:$0xff]  ;;  %2566 = vset.pattern.permute.xlu1 %v2918_v32  ;;  %2565 = vset.pattern.permute.xlu0 %v2918_v32  ;;  %v2846_v3 = vld [vmem:[%s3564_s4 + $0x20] sm:$0xff] }
 0x250   : > { %v990_v35 = vpop.f32.mrb[29].mxu0  ;;  %v2661_v27 = vpop.eup %2660  ;;  %2680 = vtanh.f32 %v1098_v33  ;;  %v1102_v37 = vadd.f32 %v1101_v26, %v855_v34  ;;  %v2455_v39 = vpack.c.bf16 %v2659_v10, %v2651_v22  ;;  %v2167_v22 = vld [vmem:[%s3562_s2 + $0x40] sm:$0xff]  ;;  %v2847_v10 = vld [vmem:[%s3564_s4 + $0x28] sm:$0xff]  ;;  %v2849_v26 = vld [vmem:[%s3564_s4 + $0x38] sm:$0xff] }
 0x251   : > { %v991_v36 = vadd.f32 %v990_v35, %v855_v34  ;;  %v1103_v38 = vpop.f32.mrb[29].mxu1  ;;  %v2663_v40 = vpop.eup %2662  ;;  %2682 = vtanh.f32 %v989_v5  ;;  %v2471_v42 = vpack.c.bf16 %v2661_v27, %v2653_v29  ;;  %v2172_v29 = vld [vmem:[%s3562_s2 + $0x68] sm:$0xff]  ;;  %v2843_v33 = vld [vmem:[%s3564_s4] sm:$0xff]  ;;  %v2848_v5 = vld [vmem:[%s3564_s4 + $0x30] sm:$0xff] }
 0x252   : > { %v1104_v41 = vadd.f32 %v1103_v38, %v855_v34  ;;  %v2665_v43 = vpop.eup %2664  ;;  %2684 = vtanh.f32 %v1102_v37  ;;  %v994_v45 = vpop.f32.mrb[30].mxu0  ;;  %v2453_v46 = vpack.c.bf16 %v2663_v40, %v2655_v2  ;;  %v2842_v2 = vld [vmem:[%s3564_s4 + $0x8] sm:$0xff]  ;;  %1477 = vperm.xlu0 %2565, %v2843_v33   ;;  %v2845_v34 = vld [vmem:[%s3564_s4 + $0x18] sm:$0xff]  ;;  %v1790_v35 = vld [vmem:[%s3563_s3] sm:$0xff] }
 0x253   : > { %v2667_v47 = vpop.eup %2666  ;;  %2686 = vtanh.f32 %v991_v36  ;;  %v995_v48 = vadd.f32 %v994_v45, %v859_v44  ;;  %v1107_v49 = vpop.f32.mrb[30].mxu1  ;;  %v2469_v51 = vpack.c.bf16 %v2665_v43, %v2657_v4  ;;  %1481 = vperm.xlu1 %2566, %v2842_v2   ;;  %v2844_v4 = vld [vmem:[%s3564_s4 + $0x10] sm:$0xff]  ;;  %v1791_v27 = vld [vmem:[%s3563_s3 + $0x8] sm:$0xff]  ;;  %v1794_v36 = vld [vmem:[%s3563_s3 + $0x20] sm:$0xff] }
 0x254   : > { %v996_v50 = vpop.f32.mrb[31].mxu0  ;;  %v2669_v52 = vpop.eup %2668  ;;  %2688 = vtanh.f32 %v1104_v41  ;;  %v1108_v53 = vadd.f32 %v1107_v49, %v859_v44  ;;  %2454 = vmatprep.subr.bf16.mxu0 %v2453_v46  ;;  %v1792_v37 = vld [vmem:[%s3563_s3 + $0x10] sm:$0xff]  ;;  %v1793_v38 = vld [vmem:[%s3563_s3 + $0x18] sm:$0xff]  ;;  %v1922_v40 = vld [vmem:[%s3564_s4] sm:$0x1]  ;;  %v2919_v41 = vmov 4  }
 0x255   : > { %v997_v54 = vadd.f32 %v996_v50, %v859_v44  ;;  %v1109_v55 = vpop.f32.mrb[31].mxu1  ;;  %v2671_v0 = vpop.eup %2670  ;;  %2690 = vtanh.f32 %v995_v48  ;;  %2470 = vmatprep.subr.bf16.mxu1 %v2469_v51  ;;  %2456 = vmatpush1.bf16.msra.mxu0 %v2455_v39  ;;  %v1795_v39 = vld [vmem:[%s3563_s3 + $0x28] sm:$0xff] }
 0x256   : > { %v1110_v6 = vadd.f32 %v1109_v55, %v859_v44  ;;  %v2673_v56 = vpop.eup %2672  ;;  %2692 = vtanh.f32 %v1108_v53  ;;  %2472 = vmatpush1.bf16.msra.mxu1 %v2471_v42  ;;  %1489 = vperm.xlu0 %2565, %v2845_v34   ;;  %v1797_v42 = vld [vmem:[%s3563_s3 + $0x38] sm:$0xff]  ;;  %v1155_v43 = vpop.permute.xlu1 %1154 }
 0x257   : > { %v2675_v57 = vpop.eup %2674  ;;  %2694 = vtanh.f32 %v997_v54  ;;  %1485 = vperm.xlu1 %2566, %v2844_v4   ;;  %v1159_v48 = vpop.permute.xlu0 %1158 }
 0x258   : > { %v2677_v58 = vpop.eup %2676  ;;  %2696 = vtanh.f32 %v1110_v6  ;;  %v2459_v60 = vpack.c.bf16 %v2675_v57, %v2667_v47 }
 0x259   : > { %v2679_v61 = vpop.eup %2678  ;;  %v2475_v62 = vpack.c.bf16 %v2677_v58, %v2669_v52 }
 0x25a   : > { %v2681_v63 = vpop.eup %2680  ;;  %v2457_v7 = vpack.c.bf16 %v2679_v61, %v2671_v0  ;;  %1497 = vperm.xlu0 %2565, %v2847_v10   ;;  %v1163_v6 = vpop.permute.xlu1 %1162 }
 0x25b   : > { %v2683_v8 = vpop.eup %2682  ;;  %v2473_v9 = vpack.c.bf16 %v2681_v63, %v2673_v56  ;;  %1493 = vperm.xlu1 %2566, %v2846_v3  }
 0x25c   : > { %v2685_v11 = vpop.eup %2684  ;;  %2458 = vmatprep.subr.bf16.mxu0 %v2457_v7 }
 0x25d   : > { %v2687_v12 = vpop.eup %2686  ;;  %2474 = vmatprep.subr.bf16.mxu1 %v2473_v9  ;;  %2460 = vmatpush1.bf16.msra.mxu0 %v2459_v60 }
 0x25e   : > { %v2689_v13 = vpop.eup %2688  ;;  %2476 = vmatpush1.bf16.msra.mxu1 %v2475_v62  ;;  %1505 = vperm.xlu0 %2565, %v2849_v26  }
 0x25f   : > { %v2691_v14 = vpop.eup %2690  ;;  %1501 = vperm.xlu1 %2566, %v2848_v5  }
 0x260   : > { %v2693_v15 = vpop.eup %2692  ;;  %v2463_v16 = vpack.c.bf16 %v2691_v14, %v2683_v8 }
 0x261   : > { %v2695_v17 = vpop.eup %2694  ;;  %v2479_v18 = vpack.c.bf16 %v2693_v15, %v2685_v11 }
 0x262   : > { %v2697_v19 = vpop.eup %2696  ;;  %v2461_v20 = vpack.c.bf16 %v2695_v17, %v2687_v12  ;;  %2568 = vset.pattern.permute.xlu0 %v2914_v1 }
 0x263   : > { %v2477_v21 = vpack.c.bf16 %v2697_v19, %v2689_v13  ;;  %2567 = vset.pattern.permute.xlu1 %v2914_v1  ;;  %1805 = vperm.xlu0 %2568, %v1791_v27   ;;  %v1796_v1 = vld [vmem:[%s3563_s3 + $0x30] sm:$0xff]  ;;  %v1167_v13 = vpop.permute.xlu1 %1166 }
 0x264   : > { %2462 = vmatprep.subr.bf16.mxu0 %v2461_v20  ;;  %1800 = vperm.xlu1 %2567, %v1790_v35  }
 0x265   : > { %2478 = vmatprep.subr.bf16.mxu1 %v2477_v21  ;;  %2464 = vmatpush1.bf16.msra.mxu0 %v2463_v16 }
 0x266   : > { %2480 = vmatpush1.bf16.msra.mxu1 %v2479_v18 }
 0x267   : > { %1820 = vperm.xlu0 %2568, %v1794_v36  }
 0x268   : > { %2175 = vmatmul.mubr.msk.f32.vlgmr.msra.gmra.mrb[32].mxu0 %vm861_vm2, %v2167_v22  ;;  %1810 = vperm.xlu1 %2567, %v1792_v37   ;;  %v1175_v37 = vpop.permute.xlu1 %1174 }
 0x269   : > { %2183 = vmatmul.mubr.msk.f32.vlgmr.msra.gmra.mrb[32].mxu1 %vm861_vm2, %v2167_v22  ;;  %1279 = vmatprep.mubr.f32.mxu0 %v2915_v59 }
 0x26a   : > { %1392 = vmatprep.mubr.f32.mxu1 %v2915_v59 }
 0x26b   : > { %1830 = vperm.xlu0 %2568, %v1796_v1  }
 0x26c   : > { %2176 = vmatmul.mubr.msk.f32.gmra.mrb[34].mxu0 %vm861_vm2, %v2168_v23  ;;  %1815 = vperm.xlu1 %2567, %v1793_v38  }
 0x26d   : > { %2184 = vmatmul.mubr.msk.f32.gmra.mrb[34].mxu1 %vm861_vm2, %v2168_v23  ;;  %1285 = vmatprep.mubr.f32.mxu0 %v2915_v59 }
 0x26e   : > { %1398 = vmatprep.mubr.f32.mxu1 %v2915_v59 }
 0x26f   : > { %2569 = vset.pattern.permute.xlu0 %v2919_v41 }
 0x270   : > { %2177 = vmatmul.mubr.msk.f32.gmra.mrb[36].mxu0 %vm861_vm2, %v2169_v24  ;;  %1825 = vperm.xlu1 %2567, %v1795_v39  }
 0x271   : > { %2185 = vmatmul.mubr.msk.f32.gmra.mrb[36].mxu1 %vm861_vm2, %v2169_v24  ;;  %1291 = vmatprep.mubr.f32.mxu0 %v2915_v59 }
 0x272   : > { %1404 = vmatprep.mubr.f32.mxu1 %v2915_v59  ;;  %1925 = vperm.xlu0 %2569, %v1922_v40  }
 0x274   : > { %2178 = vmatmul.mubr.msk.f32.gmra.mrb[38].mxu0 %vm861_vm2, %v2170_v25  ;;  %1835 = vperm.xlu1 %2567, %v1797_v42  }
 0x275   : > { %2186 = vmatmul.mubr.msk.f32.gmra.mrb[38].mxu1 %vm861_vm2, %v2170_v25  ;;  %1297 = vmatprep.mubr.f32.mxu0 %v2915_v59 }
 0x276   : > { %1410 = vmatprep.mubr.f32.mxu1 %v2915_v59 }
 0x278   : > { %2179 = vmatmul.mubr.msk.f32.gmra.mrb[40].mxu0 %vm861_vm2, %v2171_v28 }
 0x279   : > { %2187 = vmatmul.mubr.msk.f32.gmra.mrb[40].mxu1 %vm861_vm2, %v2171_v28  ;;  %1303 = vmatprep.mubr.f32.mxu0 %v2915_v59  ;;  %v1171_v28 = vpop.permute.xlu0 %1170 }
 0x27a   : > { %1416 = vmatprep.mubr.f32.mxu1 %v2915_v59 }
 0x27c   : > { %2180 = vmatmul.mubr.msk.f32.gmra.mrb[42].mxu0 %vm861_vm2, %v2172_v29 }
 0x27d   : > { %2188 = vmatmul.mubr.msk.f32.gmra.mrb[42].mxu1 %vm861_vm2, %v2172_v29  ;;  %1309 = vmatprep.mubr.f32.mxu0 %v2915_v59 }
 0x27e   : > { %1422 = vmatprep.mubr.f32.mxu1 %v2915_v59 }
 0x280   : > { %2181 = vmatmul.mubr.msk.f32.gmra.mrb[44].mxu0 %vm861_vm2, %v2173_v30 }
 0x281   : > { %2189 = vmatmul.mubr.msk.f32.gmra.mrb[44].mxu1 %vm861_vm2, %v2173_v30  ;;  %1315 = vmatprep.mubr.f32.mxu0 %v2915_v59 }
 0x282   : > { %1428 = vmatprep.mubr.f32.mxu1 %v2915_v59 }
 0x284   : > { %2182 = vmatmul.mubr.msk.f32.gmra.mrb[46].mxu0 %vm861_vm2, %v2174_v31 }
 0x285   : > { %2190 = vmatmul.mubr.msk.f32.gmra.mrb[46].mxu1 %vm861_vm2, %v2174_v31  ;;  %1596 = vmatprep.mubr.f32.mxu0 %v2915_v59 }
 0x286   : > { %1709 = vmatprep.mubr.f32.mxu1 %v2915_v59 }
 0x33b   : > { %v1275_v44 = vpop.f32.mrb[32].mxu0 }
 0x33c   : > { %v1276_v45 = vadd.f32 %v1275_v44, %v1155_v43  ;;  %v1388_v46 = vpop.f32.mrb[32].mxu1  ;;  %v1277_v47 = vpop.f32.mrb[33].mxu0 }
 0x33d   : > { %v1389_v49 = vadd.f32 %v1388_v46, %v1155_v43  ;;  %v1278_v50 = vadd.f32 %v1277_v47, %v1155_v43  ;;  %v1390_v51 = vpop.f32.mrb[33].mxu1 }
 0x33e   : > { %2698 = vtanh.f32 %v1276_v45  ;;  %v1391_v52 = vadd.f32 %v1390_v51, %v1155_v43 }
 0x33f   : > { %2700 = vtanh.f32 %v1389_v49  ;;  %v1281_v53 = vpop.f32.mrb[34].mxu0 }
 0x340   : > { %2702 = vtanh.f32 %v1278_v50  ;;  %v1282_v54 = vadd.f32 %v1281_v53, %v1159_v48  ;;  %v1394_v55 = vpop.f32.mrb[34].mxu1  ;;  %v1283_v0 = vpop.f32.mrb[35].mxu0 }
 0x341   : > { %2704 = vtanh.f32 %v1391_v52  ;;  %v1395_v56 = vadd.f32 %v1394_v55, %v1159_v48  ;;  %v1284_v57 = vadd.f32 %v1283_v0, %v1159_v48  ;;  %v1396_v58 = vpop.f32.mrb[35].mxu1  ;;  %v1179_v50 = vpop.permute.xlu0 %1178 }
 0x342   : > { %2706 = vtanh.f32 %v1282_v54  ;;  %v1397_v60 = vadd.f32 %v1396_v58, %v1159_v48 }
 0x343   : > { %2708 = vtanh.f32 %v1395_v56  ;;  %v1287_v61 = vpop.f32.mrb[36].mxu0 }
 0x344   : > { %2710 = vtanh.f32 %v1284_v57  ;;  %v1288_v62 = vadd.f32 %v1287_v61, %v1163_v6  ;;  %v1400_v63 = vpop.f32.mrb[36].mxu1  ;;  %v1289_v7 = vpop.f32.mrb[37].mxu0 }
 0x345   : > { %2712 = vtanh.f32 %v1397_v60  ;;  %v1401_v8 = vadd.f32 %v1400_v63, %v1163_v6  ;;  %v1290_v9 = vadd.f32 %v1289_v7, %v1163_v6  ;;  %v1402_v11 = vpop.f32.mrb[37].mxu1  ;;  %v1183_v7 = vpop.permute.xlu1 %1182 }
 0x346   : > { %2714 = vtanh.f32 %v1288_v62  ;;  %v1403_v12 = vadd.f32 %v1402_v11, %v1163_v6 }
 0x347   : > { %2716 = vtanh.f32 %v1401_v8  ;;  %v1293_v14 = vpop.f32.mrb[38].mxu0 }
 0x348   : > { %v2699_v15 = vpop.eup %2698  ;;  %2718 = vtanh.f32 %v1290_v9  ;;  %v1294_v16 = vadd.f32 %v1293_v14, %v1167_v13  ;;  %v1406_v17 = vpop.f32.mrb[38].mxu1 }
 0x349   : > { %v1295_v18 = vpop.f32.mrb[39].mxu0  ;;  %v2701_v19 = vpop.eup %2700  ;;  %2720 = vtanh.f32 %v1403_v12  ;;  %v1407_v20 = vadd.f32 %v1406_v17, %v1167_v13 }
 0x34a   : > { %v1296_v21 = vadd.f32 %v1295_v18, %v1167_v13  ;;  %v1408_v22 = vpop.f32.mrb[39].mxu1  ;;  %v2703_v23 = vpop.eup %2702  ;;  %2722 = vtanh.f32 %v1294_v16 }
 0x34b   : > { %v1409_v24 = vadd.f32 %v1408_v22, %v1167_v13  ;;  %v2705_v25 = vpop.eup %2704  ;;  %2724 = vtanh.f32 %v1407_v20  ;;  %v1299_v29 = vpop.f32.mrb[40].mxu0 }
 0x34c   : > { %v2707_v30 = vpop.eup %2706  ;;  %2726 = vtanh.f32 %v1296_v21  ;;  %v1300_v31 = vadd.f32 %v1299_v29, %v1171_v28  ;;  %v1412_v32 = vpop.f32.mrb[40].mxu1 }
 0x34d   : > { %v1301_v2 = vpop.f32.mrb[41].mxu0  ;;  %v2709_v33 = vpop.eup %2708  ;;  %2728 = vtanh.f32 %v1409_v24  ;;  %v1413_v4 = vadd.f32 %v1412_v32, %v1171_v28  ;;  %v2483_v10 = vpack.c.bf16 %v2707_v30, %v2699_v15 }
 0x34e   : > { %v1302_v34 = vadd.f32 %v1301_v2, %v1171_v28  ;;  %v1414_v3 = vpop.f32.mrb[41].mxu1  ;;  %v2711_v5 = vpop.eup %2710  ;;  %2730 = vtanh.f32 %v1300_v31  ;;  %v2499_v35 = vpack.c.bf16 %v2709_v33, %v2701_v19 }
 0x34f   : > { %v1415_v26 = vadd.f32 %v1414_v3, %v1171_v28  ;;  %v2713_v27 = vpop.eup %2712  ;;  %2732 = vtanh.f32 %v1413_v4  ;;  %v1305_v36 = vpop.f32.mrb[42].mxu0  ;;  %v2481_v38 = vpack.c.bf16 %v2711_v5, %v2703_v23 }
 0x350   : > { %v2715_v1 = vpop.eup %2714  ;;  %2734 = vtanh.f32 %v1302_v34  ;;  %v1306_v39 = vadd.f32 %v1305_v36, %v1175_v37  ;;  %v1418_v40 = vpop.f32.mrb[42].mxu1  ;;  %v2497_v42 = vpack.c.bf16 %v2713_v27, %v2705_v25 }
 0x351   : > { %v1307_v41 = vpop.f32.mrb[43].mxu0  ;;  %v2717_v43 = vpop.eup %2716  ;;  %2736 = vtanh.f32 %v1415_v26  ;;  %v1419_v44 = vadd.f32 %v1418_v40, %v1175_v37  ;;  %2482 = vmatprep.subr.bf16.mxu0 %v2481_v38  ;;  %v2191_v38 = vld [vmem:[%s3562_s2 + $0x80] sm:$0xff]  ;;  %v2194_v40 = vld [vmem:[%s3562_s2 + $0x98] sm:$0xff] }
 0x352   : > { %v1308_v45 = vadd.f32 %v1307_v41, %v1175_v37  ;;  %v1420_v46 = vpop.f32.mrb[43].mxu1  ;;  %v2719_v47 = vpop.eup %2718  ;;  %2738 = vtanh.f32 %v1306_v39  ;;  %2498 = vmatprep.subr.bf16.mxu1 %v2497_v42  ;;  %2484 = vmatpush1.bf16.msra.mxu0 %v2483_v10  ;;  %v2193_v39 = vld [vmem:[%s3562_s2 + $0x90] sm:$0xff]  ;;  %v2195_v41 = vld [vmem:[%s3562_s2 + $0xa0] sm:$0xff]  ;;  %v2196_v42 = vld [vmem:[%s3562_s2 + $0xa8] sm:$0xff] }
 0x353   : > { %v1421_v48 = vadd.f32 %v1420_v46, %v1175_v37  ;;  %v2721_v49 = vpop.eup %2720  ;;  %2740 = vtanh.f32 %v1419_v44  ;;  %2500 = vmatpush1.bf16.msra.mxu1 %v2499_v35  ;;  %v1311_v51 = vpop.f32.mrb[44].mxu0  ;;  %v2198_v44 = vld [vmem:[%s3562_s2 + $0xb8] sm:$0xff] }
 0x354   : > { %v2723_v52 = vpop.eup %2722  ;;  %2742 = vtanh.f32 %v1308_v45  ;;  %v1312_v53 = vadd.f32 %v1311_v51, %v1179_v50  ;;  %v1424_v54 = vpop.f32.mrb[44].mxu1 }
 0x355   : > { %v1313_v55 = vpop.f32.mrb[45].mxu0  ;;  %v2725_v0 = vpop.eup %2724  ;;  %2744 = vtanh.f32 %v1421_v48  ;;  %v1425_v6 = vadd.f32 %v1424_v54, %v1179_v50  ;;  %v2487_v58 = vpack.c.bf16 %v2723_v52, %v2715_v1  ;;  %v2192_v1 = vld [vmem:[%s3562_s2 + $0x88] sm:$0xff] }
 0x356   : > { %v1314_v56 = vadd.f32 %v1313_v55, %v1179_v50  ;;  %v1426_v57 = vpop.f32.mrb[45].mxu1  ;;  %v2727_v60 = vpop.eup %2726  ;;  %2746 = vtanh.f32 %v1312_v53  ;;  %v2503_v62 = vpack.c.bf16 %v2725_v0, %v2717_v43  ;;  %v2197_v43 = vld [vmem:[%s3562_s2 + $0xb0] sm:$0xff] }
 0x357   : > { %v1427_v61 = vadd.f32 %v1426_v57, %v1179_v50  ;;  %v2729_v63 = vpop.eup %2728  ;;  %2748 = vtanh.f32 %v1425_v6  ;;  %v1317_v8 = vpop.f32.mrb[46].mxu0  ;;  %v2485_v9 = vpack.c.bf16 %v2727_v60, %v2719_v47 }
 0x358   : > { %v2731_v11 = vpop.eup %2730  ;;  %2750 = vtanh.f32 %v1314_v56  ;;  %v1318_v12 = vadd.f32 %v1317_v8, %v1183_v7  ;;  %v1430_v13 = vpop.f32.mrb[46].mxu1  ;;  %v2501_v15 = vpack.c.bf16 %v2729_v63, %v2721_v49 }
 0x359   : > { %v1319_v14 = vpop.f32.mrb[47].mxu0  ;;  %v2733_v16 = vpop.eup %2732  ;;  %2752 = vtanh.f32 %v1427_v61  ;;  %v1431_v17 = vadd.f32 %v1430_v13, %v1183_v7  ;;  %2486 = vmatprep.subr.bf16.mxu0 %v2485_v9 }
 0x35a   : > { %v1320_v18 = vadd.f32 %v1319_v14, %v1183_v7  ;;  %v1432_v19 = vpop.f32.mrb[47].mxu1  ;;  %v2735_v20 = vpop.eup %2734  ;;  %2754 = vtanh.f32 %v1318_v12  ;;  %2502 = vmatprep.subr.bf16.mxu1 %v2501_v15  ;;  %2488 = vmatpush1.bf16.msra.mxu0 %v2487_v58 }
 0x35b   : > { %v1433_v21 = vadd.f32 %v1432_v19, %v1183_v7  ;;  %v2737_v22 = vpop.eup %2736  ;;  %2756 = vtanh.f32 %v1431_v17  ;;  %2504 = vmatpush1.bf16.msra.mxu1 %v2503_v62  ;;  %v1482_v45 = vpop.permute.xlu1 %1481 }
 0x35c   : > { %v2739_v23 = vpop.eup %2738  ;;  %2758 = vtanh.f32 %v1320_v18  ;;  %v1478_v46 = vpop.permute.xlu0 %1477 }
 0x35d   : > { %v2741_v24 = vpop.eup %2740  ;;  %2760 = vtanh.f32 %v1433_v21  ;;  %v2491_v25 = vpack.c.bf16 %v2739_v23, %v2731_v11 }
 0x35e   : > { %v2743_v28 = vpop.eup %2742  ;;  %v2507_v29 = vpack.c.bf16 %v2741_v24, %v2733_v16 }
 0x35f   : > { %v2745_v30 = vpop.eup %2744  ;;  %v2489_v31 = vpack.c.bf16 %v2743_v28, %v2735_v20  ;;  %v1486_v47 = vpop.permute.xlu1 %1485 }
 0x360   : > { %v2747_v32 = vpop.eup %2746  ;;  %v2505_v2 = vpack.c.bf16 %v2745_v30, %v2737_v22  ;;  %v1490_v48 = vpop.permute.xlu0 %1489 }
 0x361   : > { %v2749_v33 = vpop.eup %2748  ;;  %2490 = vmatprep.subr.bf16.mxu0 %v2489_v31 }
 0x362   : > { %v2751_v4 = vpop.eup %2750  ;;  %2506 = vmatprep.subr.bf16.mxu1 %v2505_v2  ;;  %2492 = vmatpush1.bf16.msra.mxu0 %v2491_v25 }
 0x363   : > { %v2753_v34 = vpop.eup %2752  ;;  %2508 = vmatpush1.bf16.msra.mxu1 %v2507_v29  ;;  %v3489_v50 = vpop.permute.xlu1 %1493 }
 0x364   : > { %v2755_v3 = vpop.eup %2754  ;;  %v3491_v6 = vpop.permute.xlu0 %1497 }
 0x365   : > { %v2757_v10 = vpop.eup %2756  ;;  %v2495_v5 = vpack.c.bf16 %v2755_v3, %v2747_v32 }
 0x366   : > { %v2759_v26 = vpop.eup %2758  ;;  %v2511_v35 = vpack.c.bf16 %v2757_v10, %v2749_v33 }
 0x367   : > { %v2761_v27 = vpop.eup %2760  ;;  %v2493_v37 = vpack.c.bf16 %v2759_v26, %v2751_v4  ;;  %v3493_v7 = vpop.permute.xlu1 %1501 }
 0x368   : > { %v2509_v36 = vpack.c.bf16 %v2761_v27, %v2753_v34  ;;  %v3495_v11 = vpop.permute.xlu0 %1505 }
 0x369   : > { %2494 = vmatprep.subr.bf16.mxu0 %v2493_v37 }
 0x36a   : > { %2510 = vmatprep.subr.bf16.mxu1 %v2509_v36  ;;  %2496 = vmatpush1.bf16.msra.mxu0 %v2495_v5 }
 0x36b   : > { %2512 = vmatpush1.bf16.msra.mxu1 %v2511_v35  ;;  %v1801_v20 = vpop.permute.xlu1 %1800 }
 0x36c   : > { %v1806_v2 = vpop.permute.xlu0 %1805 }
 0x36d   : > { %2199 = vmatmul.mubr.msk.f32.vlgmr.msra.gmra.mrb[48].mxu0 %vm861_vm2, %v2191_v38 }
 0x36e   : > { %2207 = vmatmul.mubr.msk.f32.vlgmr.msra.gmra.mrb[48].mxu1 %vm861_vm2, %v2191_v38  ;;  %1602 = vmatprep.mubr.f32.mxu0 %v2915_v59 }
 0x36f   : > { %1715 = vmatprep.mubr.f32.mxu1 %v2915_v59 }
 0x371   : > { %2200 = vmatmul.mubr.msk.f32.gmra.mrb[50].mxu0 %vm861_vm2, %v2192_v1 }
 0x372   : > { %2208 = vmatmul.mubr.msk.f32.gmra.mrb[50].mxu1 %vm861_vm2, %v2192_v1  ;;  %1608 = vmatprep.mubr.f32.mxu0 %v2915_v59 }
 0x373   : > { %1721 = vmatprep.mubr.f32.mxu1 %v2915_v59 }
 0x375   : > { %2201 = vmatmul.mubr.msk.f32.gmra.mrb[52].mxu0 %vm861_vm2, %v2193_v39 }
 0x376   : > { %2209 = vmatmul.mubr.msk.f32.gmra.mrb[52].mxu1 %vm861_vm2, %v2193_v39  ;;  %1614 = vmatprep.mubr.f32.mxu0 %v2915_v59  ;;  %v1811_v39 = vpop.permute.xlu1 %1810 }
 0x377   : > { %1727 = vmatprep.mubr.f32.mxu1 %v2915_v59 }
 0x379   : > { %2202 = vmatmul.mubr.msk.f32.gmra.mrb[54].mxu0 %vm861_vm2, %v2194_v40 }
 0x37a   : > { %2210 = vmatmul.mubr.msk.f32.gmra.mrb[54].mxu1 %vm861_vm2, %v2194_v40  ;;  %1620 = vmatprep.mubr.f32.mxu0 %v2915_v59 }
 0x37b   : > { %1733 = vmatprep.mubr.f32.mxu1 %v2915_v59 }
 0x37d   : > { %2203 = vmatmul.mubr.msk.f32.gmra.mrb[56].mxu0 %vm861_vm2, %v2195_v41 }
 0x37e   : > { %2211 = vmatmul.mubr.msk.f32.gmra.mrb[56].mxu1 %vm861_vm2, %v2195_v41  ;;  %1626 = vmatprep.mubr.f32.mxu0 %v2915_v59 }
 0x37f   : > { %1739 = vmatprep.mubr.f32.mxu1 %v2915_v59 }
 0x381   : > { %2204 = vmatmul.mubr.msk.f32.gmra.mrb[58].mxu0 %vm861_vm2, %v2196_v42 }
 0x382   : > { %2212 = vmatmul.mubr.msk.f32.gmra.mrb[58].mxu1 %vm861_vm2, %v2196_v42  ;;  %1632 = vmatprep.mubr.f32.mxu0 %v2915_v59 }
 0x383   : > { %1745 = vmatprep.mubr.f32.mxu1 %v2915_v59 }
 0x385   : > { %2205 = vmatmul.mubr.msk.f32.gmra.mrb[60].mxu0 %vm861_vm2, %v2197_v43 }
 0x386   : > { %2213 = vmatmul.mubr.msk.f32.gmra.mrb[60].mxu1 %vm861_vm2, %v2197_v43  ;;  %1638 = vmatprep.mubr.f32.mxu0 %v2915_v59 }
 0x387   : > { %1751 = vmatprep.mubr.f32.mxu1 %v2915_v59 }
 0x389   : > { %2206 = vmatmul.mubr.msk.f32.gmra.mrb[62].mxu0 %vm861_vm2, %v2198_v44 }
 0x38a   : > { %2214 = vmatmul.mubr.msk.f32.gmra.mrb[62].mxu1 %vm861_vm2, %v2198_v44 }
 0x440   : > { %v1598_v49 = vpop.f32.mrb[48].mxu0 }
 0x441   : > { %v1599_v51 = vadd.f32 %v1598_v49, %v1478_v46  ;;  %v1711_v52 = vpop.f32.mrb[48].mxu1  ;;  %v1600_v53 = vpop.f32.mrb[49].mxu0 }
 0x442   : > { %v1712_v54 = vadd.f32 %v1711_v52, %v1478_v46  ;;  %v1601_v55 = vadd.f32 %v1600_v53, %v1478_v46  ;;  %v1713_v0 = vpop.f32.mrb[49].mxu1 }
 0x443   : > { %2762 = vtanh.f32 %v1599_v51  ;;  %v1714_v59 = vadd.f32 %v1713_v0, %v1478_v46 }
 0x444   : > { %2764 = vtanh.f32 %v1712_v54  ;;  %v1604_v56 = vpop.f32.mrb[50].mxu0 }
 0x445   : > { %2766 = vtanh.f32 %v1601_v55  ;;  %v1605_v57 = vadd.f32 %v1604_v56, %v1482_v45  ;;  %v1717_v58 = vpop.f32.mrb[50].mxu1  ;;  %v1606_v60 = vpop.f32.mrb[51].mxu0 }
 0x446   : > { %2768 = vtanh.f32 %v1714_v59  ;;  %v1718_v61 = vadd.f32 %v1717_v58, %v1482_v45  ;;  %v1607_v62 = vadd.f32 %v1606_v60, %v1482_v45  ;;  %v1719_v63 = vpop.f32.mrb[51].mxu1 }
 0x447   : > { %2770 = vtanh.f32 %v1605_v57  ;;  %v1720_v8 = vadd.f32 %v1719_v63, %v1482_v45 }
 0x448   : > { %2772 = vtanh.f32 %v1718_v61  ;;  %v1610_v9 = vpop.f32.mrb[52].mxu0 }
 0x449   : > { %2774 = vtanh.f32 %v1607_v62  ;;  %v1611_v12 = vadd.f32 %v1610_v9, %v1486_v47  ;;  %v1723_v13 = vpop.f32.mrb[52].mxu1  ;;  %v1612_v14 = vpop.f32.mrb[53].mxu0 }
 0x44a   : > { %2776 = vtanh.f32 %v1720_v8  ;;  %v1724_v15 = vadd.f32 %v1723_v13, %v1486_v47  ;;  %v1613_v16 = vadd.f32 %v1612_v14, %v1486_v47  ;;  %v1725_v17 = vpop.f32.mrb[53].mxu1  ;;  %v1816_v13 = vpop.permute.xlu1 %1815 }
 0x44b   : > { %2778 = vtanh.f32 %v1611_v12  ;;  %v1726_v18 = vadd.f32 %v1725_v17, %v1486_v47 }
 0x44c   : > { %2780 = vtanh.f32 %v1724_v15  ;;  %v1616_v19 = vpop.f32.mrb[54].mxu0 }
 0x44d   : > { %v2763_v21 = vpop.eup %2762  ;;  %2782 = vtanh.f32 %v1613_v16  ;;  %v1617_v22 = vadd.f32 %v1616_v19, %v1490_v48  ;;  %v1729_v23 = vpop.f32.mrb[54].mxu1 }
 0x44e   : > { %v1618_v24 = vpop.f32.mrb[55].mxu0  ;;  %v2765_v25 = vpop.eup %2764  ;;  %2784 = vtanh.f32 %v1726_v18  ;;  %v1730_v28 = vadd.f32 %v1729_v23, %v1490_v48  ;;  %v1838_v3 = vmul.f32 %v2763_v21, %v1801_v20 }
 0x44f   : > { %v1619_v29 = vadd.f32 %v1618_v24, %v1490_v48  ;;  %v1731_v30 = vpop.f32.mrb[55].mxu1  ;;  %v2767_v31 = vpop.eup %2766  ;;  %2786 = vtanh.f32 %v1617_v22  ;;  %v1840_v10 = vmul.f32 %v2765_v25, %v1801_v20 }
 0x450   : > { %v1732_v32 = vadd.f32 %v1731_v30, %v1490_v48  ;;  %v2769_v33 = vpop.eup %2768  ;;  %2788 = vtanh.f32 %v1730_v28  ;;  %v1622_v4 = vpop.f32.mrb[56].mxu0  ;;  %v1839_v41 = vmul.f32 %v2767_v31, %v1801_v20 }
 0x451   : > { %v2771_v34 = vpop.eup %2770  ;;  %2790 = vtanh.f32 %v1619_v29  ;;  %v1623_v5 = vadd.f32 %v1622_v4, %v3489_v50  ;;  %v1735_v26 = vpop.f32.mrb[56].mxu1  ;;  %v1841_v45 = vmul.f32 %v2769_v33, %v1801_v20 }
 0x452   : > { %v1624_v35 = vpop.f32.mrb[57].mxu0  ;;  %v2773_v27 = vpop.eup %2772  ;;  %2792 = vtanh.f32 %v1732_v32  ;;  %v1736_v37 = vadd.f32 %v1735_v26, %v3489_v50  ;;  %v1842_v1 = vmul.f32 %v2771_v34, %v1806_v2 }
 0x453   : > { %v1625_v36 = vadd.f32 %v1624_v35, %v3489_v50  ;;  %v1737_v38 = vpop.f32.mrb[57].mxu1  ;;  %v2775_v40 = vpop.eup %2774  ;;  %2794 = vtanh.f32 %v1623_v5  ;;  %v1844_v43 = vmul.f32 %v2773_v27, %v1806_v2 }
 0x454   : > { %v1738_v42 = vadd.f32 %v1737_v38, %v3489_v50  ;;  %v2777_v44 = vpop.eup %2776  ;;  %2796 = vtanh.f32 %v1736_v37  ;;  %v1843_v46 = vmul.f32 %v2775_v40, %v1806_v2  ;;  %v1870_v47 = vadd.f32 %v1842_v1, %v1838_v3  ;;  %v1628_v48 = vpop.f32.mrb[58].mxu0 }
 0x455   : > { %v2779_v49 = vpop.eup %2778  ;;  %2798 = vtanh.f32 %v1625_v36  ;;  %v1845_v51 = vmul.f32 %v2777_v44, %v1806_v2  ;;  %v1896_v52 = vadd.f32 %v1844_v43, %v1840_v10  ;;  %v1629_v53 = vadd.f32 %v1628_v48, %v3491_v6  ;;  %v1741_v54 = vpop.f32.mrb[58].mxu1 }
 0x456   : > { %v1630_v55 = vpop.f32.mrb[59].mxu0  ;;  %v2781_v0 = vpop.eup %2780  ;;  %2800 = vtanh.f32 %v1738_v42  ;;  %v1883_v59 = vadd.f32 %v1843_v46, %v1839_v41  ;;  %v1846_v56 = vmul.f32 %v2779_v49, %v1811_v39  ;;  %v1742_v50 = vadd.f32 %v1741_v54, %v3491_v6 }
 0x457   : > { %v1743_v57 = vpop.f32.mrb[59].mxu1  ;;  %v2783_v58 = vpop.eup %2782  ;;  %v1909_v60 = vadd.f32 %v1845_v51, %v1841_v45  ;;  %v1848_v61 = vmul.f32 %v2781_v0, %v1811_v39  ;;  %2802 = vtanh.f32 %v1629_v53  ;;  %v1631_v62 = vadd.f32 %v1630_v55, %v3491_v6 }
 0x458   : > { %v2785_v63 = vpop.eup %2784  ;;  %v1847_v8 = vmul.f32 %v2783_v58, %v1811_v39  ;;  %v1871_v9 = vadd.f32 %v1870_v47, %v1846_v56  ;;  %2804 = vtanh.f32 %v1742_v50  ;;  %v1744_v12 = vadd.f32 %v1743_v57, %v3491_v6  ;;  %v1634_v14 = vpop.f32.mrb[60].mxu0 }
 0x459   : > { %v2787_v15 = vpop.eup %2786  ;;  %v1849_v16 = vmul.f32 %v2785_v63, %v1811_v39  ;;  %v1897_v17 = vadd.f32 %v1896_v52, %v1848_v61  ;;  %2806 = vtanh.f32 %v1631_v62  ;;  %v1635_v18 = vadd.f32 %v1634_v14, %v3493_v7  ;;  %v1747_v19 = vpop.f32.mrb[60].mxu1 }
 0x45a   : > { %v1636_v20 = vpop.f32.mrb[61].mxu0  ;;  %v2789_v21 = vpop.eup %2788  ;;  %v1884_v22 = vadd.f32 %v1883_v59, %v1847_v8  ;;  %2808 = vtanh.f32 %v1744_v12  ;;  %v1850_v23 = vmul.f32 %v2787_v15, %v1816_v13  ;;  %v1748_v24 = vadd.f32 %v1747_v19, %v3493_v7 }
 0x45b   : > { %v1749_v25 = vpop.f32.mrb[61].mxu1  ;;  %v2791_v28 = vpop.eup %2790  ;;  %v1910_v29 = vadd.f32 %v1909_v60, %v1849_v16  ;;  %v1852_v6 = vmul.f32 %v2789_v21, %v1816_v13  ;;  %2810 = vtanh.f32 %v1635_v18  ;;  %v1637_v30 = vadd.f32 %v1636_v20, %v3493_v7 }
 0x45c   : > { %v2793_v31 = vpop.eup %2792  ;;  %v1851_v32 = vmul.f32 %v2791_v28, %v1816_v13  ;;  %v1872_v2 = vadd.f32 %v1871_v9, %v1850_v23  ;;  %2812 = vtanh.f32 %v1748_v24  ;;  %v1750_v33 = vadd.f32 %v1749_v25, %v3493_v7  ;;  %v1640_v4 = vpop.f32.mrb[62].mxu0 }
 0x45d   : > { %v1821_v34 = vpop.permute.xlu0 %1820  ;;  %v2795_v3 = vpop.eup %2794  ;;  %v1853_v10 = vmul.f32 %v2793_v31, %v1816_v13  ;;  %v1898_v5 = vadd.f32 %v1897_v17, %v1852_v6  ;;  %2814 = vtanh.f32 %v1637_v30  ;;  %v1641_v26 = vadd.f32 %v1640_v4, %v3495_v11 }
 0x45e   : > { %v1753_v35 = vpop.f32.mrb[62].mxu1  ;;  %v1642_v27 = vpop.f32.mrb[63].mxu0  ;;  %v1885_v36 = vadd.f32 %v1884_v22, %v1851_v32  ;;  %2816 = vtanh.f32 %v1750_v33  ;;  %v1854_v1 = vmul.f32 %v2795_v3, %v1821_v34 }
 0x45f   : > { %v2797_v37 = vpop.eup %2796  ;;  %v1754_v38 = vadd.f32 %v1753_v35, %v3495_v11  ;;  %v1755_v39 = vpop.f32.mrb[63].mxu1  ;;  %v1911_v41 = vadd.f32 %v1910_v29, %v1853_v10  ;;  %2818 = vtanh.f32 %v1641_v26  ;;  %v1643_v42 = vadd.f32 %v1642_v27, %v3495_v11 }
 0x460   : > { %v2799_v40 = vpop.eup %2798  ;;  %v1856_v7 = vmul.f32 %v2797_v37, %v1821_v34  ;;  %v1873_v45 = vadd.f32 %v1872_v2, %v1854_v1  ;;  %v1756_v46 = vadd.f32 %v1755_v39, %v3495_v11  ;;  %v1826_v48 = vpop.permute.xlu1 %1825 }
 0x461   : > { %v2801_v43 = vpop.eup %2800  ;;  %2820 = vtanh.f32 %v1754_v38  ;;  %v1855_v44 = vmul.f32 %v2799_v40, %v1821_v34  ;;  %v1831_v61 = vpop.permute.xlu0 %1830 }
 0x462   : > { %v2803_v47 = vpop.eup %2802  ;;  %v1857_v49 = vmul.f32 %v2801_v43, %v1821_v34  ;;  %v1899_v51 = vadd.f32 %v1898_v5, %v1856_v7  ;;  %2822 = vtanh.f32 %v1643_v42 }
 0x463   : > { %v2805_v52 = vpop.eup %2804  ;;  %v1858_v53 = vmul.f32 %v2803_v47, %v1826_v48  ;;  %v1886_v54 = vadd.f32 %v1885_v36, %v1855_v44  ;;  %2824 = vtanh.f32 %v1756_v46 }
 0x464   : > { %v2807_v55 = vpop.eup %2806  ;;  %v1860_v0 = vmul.f32 %v2805_v52, %v1826_v48  ;;  %v1912_v59 = vadd.f32 %v1911_v41, %v1857_v49  ;;  %v1836_v18 = vpop.permute.xlu1 %1835 }
 0x465   : > { %v2809_v56 = vpop.eup %2808  ;;  %v1859_v50 = vmul.f32 %v2807_v55, %v1826_v48  ;;  %v1874_v57 = vadd.f32 %v1873_v45, %v1858_v53  ;;  %v1926_v42 = vpop.permute.xlu0 %1925 }
 0x466   : > { %v2811_v58 = vpop.eup %2810  ;;  %v1861_v60 = vmul.f32 %v2809_v56, %v1826_v48  ;;  %v1900_v62 = vadd.f32 %v1899_v51, %v1860_v0 }
 0x467   : > { %v2813_v11 = vpop.eup %2812  ;;  %v1862_v63 = vmul.f32 %v2811_v58, %v1831_v61  ;;  %v1887_v8 = vadd.f32 %v1886_v54, %v1859_v50 }
 0x468   : > { %v2815_v9 = vpop.eup %2814  ;;  %v1864_v12 = vmul.f32 %v2813_v11, %v1831_v61  ;;  %v1913_v13 = vadd.f32 %v1912_v59, %v1861_v60 }
 0x469   : > { %v2817_v14 = vpop.eup %2816  ;;  %v1863_v15 = vmul.f32 %v2815_v9, %v1831_v61  ;;  %v1875_v16 = vadd.f32 %v1874_v57, %v1862_v63  ;;  %v2920_v9 = vmov 1966171168  }
 0x46a   : > { %v2819_v17 = vpop.eup %2818  ;;  %v1865_v19 = vmul.f32 %v2817_v14, %v1831_v61  ;;  %v1901_v20 = vadd.f32 %v1900_v62, %v1864_v12  ;;  %v1963_v12 = vunpack.c.l.s4 %v2920_v9 }
 0x46b   : > { %v2821_v21 = vpop.eup %2820  ;;  %v1866_v22 = vmul.f32 %v2819_v17, %v1836_v18  ;;  %v1888_v23 = vadd.f32 %v1887_v8, %v1863_v15 }
 0x46c   : > { %v2823_v24 = vpop.eup %2822  ;;  %v1868_v25 = vmul.f32 %v2821_v21, %v1836_v18  ;;  %v1914_v28 = vadd.f32 %v1913_v13, %v1865_v19  ;;  %v1965_v13 = vlaneseq  ;;  %v1964_v14 = vunpack.c.0.s8 %v1963_v12 }
 0x46d   : > { %v2825_v29 = vpop.eup %2824  ;;  %v1867_v6 = vmul.f32 %v2823_v24, %v1836_v18  ;;  %v1876_v30 = vadd.f32 %v1875_v16, %v1866_v22 }
 0x46e   : > { %v1869_v31 = vmul.f32 %v2825_v29, %v1836_v18  ;;  %v1902_v32 = vadd.f32 %v1901_v20, %v1868_v25  ;;  %v1966_v15 = vshrl.u32 %v1965_v13, 7  ;;  %vm1987_vm3 = vcmp.lt.s32.totalorder %v1965_v13, 512 }
 0x46f   : > { %v1889_v2 = vadd.f32 %v1888_v23, %v1867_v6  ;;  %v1877_v33 = vrot.slane %v1876_v30, 4 }
 0x470   : > { %v1915_v4 = vadd.f32 %v1914_v28, %v1869_v31  ;;  %v1903_v34 = vrot.slane %v1902_v32, 4  ;;  %v1967_v18 = vsub.s32 %v1964_v14, %v1966_v15 }
 0x471   : > { %v1878_v3 = vadd.f32 %v1877_v33, %v1876_v30  ;;  %v1890_v10 = vrot.slane %v1889_v2, 4 }
 0x472   : > { %v1904_v5 = vadd.f32 %v1903_v34, %v1902_v32  ;;  %v1916_v26 = vrot.slane %v1915_v4, 4 }
 0x473   : > { %v1879_v35 = vrot.slane %v1878_v3, 2  ;;  %v1891_v27 = vadd.f32 %v1890_v10, %v1889_v2 }
 0x474   : > { %v1905_v37 = vrot.slane %v1904_v5, 2  ;;  %v1917_v36 = vadd.f32 %v1916_v26, %v1915_v4 }
 0x475   : > { %v1880_v38 = vadd.f32 %v1879_v35, %v1878_v3  ;;  %v1892_v1 = vrot.slane %v1891_v27, 2 }
 0x476   : > { %v1906_v39 = vadd.f32 %v1905_v37, %v1904_v5  ;;  %v1918_v40 = vrot.slane %v1917_v36, 2 }
 0x477   : > { %v1881_v41 = vrot.slane %v1880_v38, 1  ;;  %v1893_v7 = vadd.f32 %v1892_v1, %v1891_v27 }
 0x478   : > { %v1907_v43 = vrot.slane %v1906_v39, 1  ;;  %v1919_v44 = vadd.f32 %v1918_v40, %v1917_v36 }
 0x479   : > { %v1882_v45 = vadd.f32 %v1881_v41, %v1880_v38  ;;  %v1894_v46 = vrot.slane %v1893_v7, 1 }
 0x47a   : > { %v1908_v47 = vadd.f32 %v1907_v43, %v1906_v39  ;;  %v1920_v48 = vrot.slane %v1919_v44, 1 }
 0x47b   : > { %v1895_v49 = vadd.f32 %v1894_v46, %v1893_v7  ;;  %v1928_v51 = vadd.f32 %v1926_v42, %v1882_v45 }
 0x47c   : > { %v1921_v52 = vadd.f32 %v1920_v48, %v1919_v44  ;;  %v1930_v53 = vadd.f32 %v1926_v42, %v1908_v47 }
 0x47d   : > { %v1929_v54 = vadd.f32 %v1926_v42, %v1895_v49  ;;  %v2215_v55 = vmul.f32 -1.442695, %v1928_v51 }
 0x47e   : > { %v1931_v0 = vadd.f32 %v1926_v42, %v1921_v52  ;;  %v2217_v59 = vmul.f32 -1.442695, %v1930_v53 }
 0x47f   : > { %2826 = vpow2.f32 %v2215_v55  ;;  %v2216_v56 = vmul.f32 -1.442695, %v1929_v54 }
 0x480   : > { %2828 = vpow2.f32 %v2217_v59  ;;  %v2218_v50 = vmul.f32 -1.442695, %v1931_v0 }
 0x481   : > { %2830 = vpow2.f32 %v2216_v56 }
 0x482   : > { %2832 = vpow2.f32 %v2218_v50 }
 0x489   : > { %v2827_v57 = vpop.eup %2826 }
 0x48a   : > { %v2829_v58 = vpop.eup %2828  ;;  %v1944_v60 = vadd.f32 1.0, %v2827_v57 }
 0x48b   : > { %v2831_v61 = vpop.eup %2830  ;;  %v1946_v62 = vadd.f32 1.0, %v2829_v58 }
 0x48c   : > { %v2833_v11 = vpop.eup %2832  ;;  %v1945_v63 = vadd.f32 1.0, %v2831_v61  ;;  %2834 = vrcp.f32 %v1944_v60 }
 0x48d   : > { %v1947_v8 = vadd.f32 1.0, %v2833_v11  ;;  %2836 = vrcp.f32 %v1946_v62 }
 0x48e   : > { %2838 = vrcp.f32 %v1945_v63 }
 0x48f   : > { %2840 = vrcp.f32 %v1947_v8 }
 0x496   : > { %v2835_v16 = vpop.eup %2834 }
 0x497   : > { %v2837_v17 = vpop.eup %2836 }
 0x498   : > { %v2839_v19 = vpop.eup %2838 }
 0x499   : > { %v2841_v20 = vpop.eup %2840  ;;  %v1960_v21 = vcombine.low %v2835_v16, %v2839_v19 }
 0x49a   : > { %v1961_v22 = vcombine.low %v2837_v17, %v2841_v20 }
 0x49b   : > { %v1968_v23 = vrot.slane %v1960_v21, %v1967_v18 }
 0x49c   : > { %v1975_v24 = vrot.slane %v1961_v22, %v1967_v18 }
 0x49e   : > { %v1976_v25 = vcombine.low %v1968_v23, %v1975_v24 }
 0x4a0   : > { %v1983_v28 = vrot.slane %v1976_v25, %v1967_v18 }
 0x4a2   : > { %1989 = vst.msk [vmem:[%s218_s15] sm:$0xf] %vm1987_vm3, %v1983_v28 }
 0x4a3   : > { %2863 = shalt.err (!%p2860_p3)
}
 0x4a4   : > { %s2864_s30 = scalar_lea.hbm %s3518_s23, 64  ;;  %s2868_s11 = scalar_lea.hbm %s3565_s5, 128 }
 0x4a5   : > { %p2865_p4 = scmp.ne.s32.totalorder %s3518_s23, %s2864_s30  ;;  %p2869_p9 = scmp.lt.u32.totalorder %s3518_s23, %s3565_s5 }
 0x4a6   : > { %p2870_p10 = scmp.lt.u32.totalorder %s2868_s11, %s2864_s30  ;;  %p2872_p12 = scmp.lt.u32.totalorder %s2864_s30, %s3518_s23 }
 0x4a7   : > { %p2866_p7 = pnand %p2865_p4, %p2987_p5 }
 0x4a8   : > { %p2871_p11 = por %p2870_p10, %p2869_p9 }
 0x4a9   : > { %p2867_p8 = pneg %p2866_p7 }
 0x4aa   : > { %p2873_p13 = por %p2872_p12, %p2871_p11 }
 0x4ac   : > { %p2874_p0 = pnand %p2873_p13, %p2867_p8 }
 0x4ae   : > { %2877 = shalt.err (!%p2874_p0)
}
 0x4af   : > { %2513 = dma.vmem_to_hbm [thread:$0]  (%p2987_p5), %s3520_s16, 64, %s3518_s23, %s1991_s25  }
 0x4b0 PF: > { %p2519_p1 = scmp.ge.s32.totalorder %s2912_s21, 2  ;;  %s2017_s14 = sand.u32 1, %s2900_s18  }
 0x4b1   : > { %s2018_s15 = scalar_lea.sflag [#allocation3], %s2017_s14 }
 0x4b2   : > { %p2516_p2 = pnand %p2519_p1, %p2991_p6 }
 0x4b4   : > { %2895 = dma.done.wait (!%p2516_p2), %s2018_s15, 64  }
 0x4b5   : > { %2897 = vsyncadd (!%p2516_p2), %s2018_s15, 4294967232  ;;  %p15_p3 = scmp.ge.s32.totalorder %s2975_s24, 4   ;;  %s3570_s18 = smov %s2904_s19 }
 0x4b6   : > { %s3571_s19 = smov %s2908_s20  ;;  %s3572_s20 = smov %s2985_s27 }
 0x4b7   : > { %s3573_s21 = smov %s2975_s24  ;;  %17 = sbr.rel (!%p15_p3) target bundleno = 3 (0x3), region = 77 }
 0x4be   :  { %2023 = vsyncpa [#allocation3], 1 }
 0x4bf   :  { %2025 = vsyncpa [#allocation3 + $0x1], 1 }

</bundles_post_ra>
